<compile_context>
chip_gen: v7x
topology: tpu7x:2x2x1
jax: 0.10.0
libtpu: 0.0.40
codegen_flags: <defaults>
</compile_context>

<pallas_src>
import functools
import math

import jax
import jax.numpy as jnp
from jax import lax
from jax.experimental import pallas as pl
from jax.experimental.pallas import tpu as pltpu


_FFN_CHUNK = 2048          # lanes of the 4E filter axis processed per FFN sub-step


# ----------------------------- in-kernel helpers -----------------------------

def _layer_norm(x, w, b, eps=1e-6):
    # x: (N, E) f32, w/b: (1, E) f32
    mean = jnp.mean(x, axis=-1, keepdims=True)
    c = x - mean
    var = jnp.mean(c * c, axis=-1, keepdims=True)
    return c * lax.rsqrt(var + eps) * w + b


def _split_heads(x2d, BB, L, H, dh):
    # (BB*L, H*dh) f32 -> (H*BB, L, dh) bf16.  H lane slices + one stack (O(H), not
    # O(BB*H)); the batch dim is folded into the einsum batch axis.
    heads = [x2d[:, h * dh:(h + 1) * dh].reshape(BB, L, dh) for h in range(H)]
    return jnp.stack(heads, axis=0).reshape(H * BB, L, dh).astype(jnp.bfloat16)


def _merge_heads(ctx, BB, T, H, dh):
    # (H*BB, T, dh) f32 -> (BB*T, H*dh) f32 (head h -> lanes [h*dh:(h+1)*dh]).
    c4 = ctx.reshape(H, BB, T, dh)
    return jnp.concatenate([c4[h].reshape(BB * T, dh) for h in range(H)], axis=-1)


def _mha(q2d, k2d, v2d, mask, BB, T, S, H, dh):
    """Multi-head attention batched over ALL (head, batch) pairs in single einsums.

    q2d: (BB*T, E) f32 (1/sqrt(dh) already folded into the Q projection weights),
    k2d / v2d: (BB*S, E) f32, mask: (T, S) additive f32.  Returns (BB*T, E) f32.
    """
    qh = _split_heads(q2d, BB, T, H, dh)                         # (H*BB, T, dh) bf16
    kh = _split_heads(k2d, BB, S, H, dh)                         # (H*BB, S, dh) bf16
    vh = _split_heads(v2d, BB, S, H, dh)                         # (H*BB, S, dh) bf16

    s = jnp.einsum("ntd,nsd->nts", qh, kh,
                   preferred_element_type=jnp.float32) + mask[None, :, :]
    s = s - jnp.max(s, axis=-1, keepdims=True)
    p = jnp.exp(s)
    p = p * pl.reciprocal(jnp.sum(p, axis=-1, keepdims=True), approx=True)

    ctx = jnp.einsum("nts,nsd->ntd", p.astype(jnp.bfloat16), vh,
                     preferred_element_type=jnp.float32)         # (H*BB, T, dh) f32
    return _merge_heads(ctx, BB, T, H, dh)                       # (BB*T, E)


# ------------------------------ Pallas kernel ---------------------------------

def decoder_stack_kernel(x_ref, enc_ref, smask_ref, cmask_ref,
                         ln1w_ref, ln1b_ref, wqkv_ref, bqkv_ref, wos_ref, bos_ref,
                         ln2w_ref, ln2b_ref, wqc_ref, bqc_ref, wkvc_ref, bkvc_ref,
                         woc_ref, boc_ref, ln3w_ref, ln3b_ref,
                         w1_ref, b1_ref, w2_ref, b2_ref,
                         lnfw_ref, lnfb_ref,
                         o_ref, acc_ref, *, num_head):
    layer = pl.program_id(1)
    BB, T, E = o_ref.shape
    S = enc_ref.shape[1]
    H = num_head
    dh = E // H
    bf16 = jnp.bfloat16

    # Layer 0: load this batch block into the VMEM-resident f32 accumulator, flattened
    # so the per-token matmuls see M = BB*T.
    @pl.when(layer == 0)
    def _():
        acc_ref[...] = x_ref[...].reshape(BB * T, E).astype(jnp.float32)

    x = acc_ref[...]                                             # (BB*T, E) f32

    # ---------------- self-attention block ----------------
    y = _layer_norm(x, ln1w_ref[0], ln1b_ref[0]).astype(bf16)
    qkv = jnp.dot(y, wqkv_ref[0],
                  preferred_element_type=jnp.float32) + bqkv_ref[0]      # (BB*T, 3E)
    ctx = _mha(qkv[:, 0:E], qkv[:, E:2 * E], qkv[:, 2 * E:3 * E],
               smask_ref[...], BB, T, T, H, dh)
    x = x + jnp.dot(ctx.astype(bf16), wos_ref[0],
                    preferred_element_type=jnp.float32) + bos_ref[0]

    # ---------------- encoder-decoder attention block ----------------
    y = _layer_norm(x, ln2w_ref[0], ln2b_ref[0]).astype(bf16)
    q = jnp.dot(y, wqc_ref[0],
                preferred_element_type=jnp.float32) + bqc_ref[0]         # (BB*T, E)
    enc = enc_ref[...].reshape(BB * S, E)                                # bf16 already
    kv = jnp.dot(enc, wkvc_ref[0],
                 preferred_element_type=jnp.float32) + bkvc_ref[0]       # (BB*S, 2E)
    ctx = _mha(q, kv[:, 0:E], kv[:, E:2 * E], cmask_ref[...], BB, T, S, H, dh)
    x = x + jnp.dot(ctx.astype(bf16), woc_ref[0],
                    preferred_element_type=jnp.float32) + boc_ref[0]

    # ---------------- feed-forward block (4E axis chunked) ----------------
    y = _layer_norm(x, ln3w_ref[0], ln3b_ref[0]).astype(bf16)
    F4 = w1_ref.shape[-1]
    n_chunks = F4 // _FFN_CHUNK if (F4 > _FFN_CHUNK and F4 % _FFN_CHUNK == 0) else 1
    chunk = F4 // n_chunks
    ffn = b2_ref[0]                                                       # (1, E) f32
    for c in range(n_chunks):
        lo = c * chunk
        h = jnp.dot(y, w1_ref[0, :, lo:lo + chunk],
                    preferred_element_type=jnp.float32) + b1_ref[0, :, lo:lo + chunk]
        h = jnp.maximum(h, 0.0).astype(bf16)
        ffn = ffn + jnp.dot(h, w2_ref[0, lo:lo + chunk, :],
                            preferred_element_type=jnp.float32)
    x = x + ffn

    acc_ref[...] = x

    # Final LayerNorm fused into the last layer iteration; output block (index depends
    # only on the batch axis) is written back to HBM when the batch block advances.
    @pl.when(layer == pl.num_programs(1) - 1)
    def _():
        o_ref[...] = _layer_norm(x, lnfw_ref[...], lnfb_ref[...]).reshape(
            BB, T, E).astype(o_ref.dtype)


# ------------------------------ Python wrapper --------------------------------

def decoder_forward(targets, enc_output, i_mask, t_self_mask, params, num_head,
                    batch_block=None, out_dtype=jnp.float32):
    """targets: (T, B, E), enc_output: (S, B, E)  (PyTorch MHA seq-major layout)."""
    x = jnp.transpose(targets, (1, 0, 2)).astype(jnp.float32)     # (B, T, E)
    enc = jnp.transpose(enc_output, (1, 0, 2)).astype(jnp.bfloat16)  # (B, S, E), cast ONCE
    t_self_mask = t_self_mask.astype(jnp.float32)                 # (T, T) additive
    i_mask = i_mask.astype(jnp.float32)                           # (T, S) additive
    B, T, E = x.shape
    S = enc.shape[1]
    NL = params["ln1_w"].shape[0]
    H = num_head

    if batch_block is None:
        # >=2 batch blocks so the "parallel" axis feeds both v7x TensorCores; size BB so
        # BB*T >~ 512 when B allows (hides the 32*E^2-byte per-layer weight DMA).
        batch_block = B // 2 if B % 2 == 0 else B
    BB = batch_block
    assert B % BB == 0, "batch_block must divide batch size"

    layer_weight_names = [
        "ln1_w", "ln1_b", "w_qkv_s", "b_qkv_s", "w_out_s", "b_out_s",
        "ln2_w", "ln2_b", "w_q_c", "b_q_c", "w_kv_c", "b_kv_c",
        "w_out_c", "b_out_c", "ln3_w", "ln3_b",
        "w_ffn1", "b_ffn1", "w_ffn2", "b_ffn2",
    ]
    layer_weights = [params[n] for n in layer_weight_names]

    def batch_spec(arr):      # activations: block over batch, constant over layer axis
        return pl.BlockSpec((BB,) + arr.shape[1:], lambda bb, l: (bb, 0, 0))

    def layer_spec(arr):      # layer-stacked weights: stream one layer per grid step
        return pl.BlockSpec((1,) + arr.shape[1:], lambda bb, l: (l, 0, 0))

    def const2d_spec(arr):    # masks / final LN params: whole array, constant index
        return pl.BlockSpec(arr.shape, lambda bb, l: (0, 0))

    in_specs = ([batch_spec(x), batch_spec(enc),
                 const2d_spec(t_self_mask), const2d_spec(i_mask)]
                + [layer_spec(w) for w in layer_weights]
                + [const2d_spec(params["last_ln_w"]),
                   const2d_spec(params["last_ln_b"])])

    # --- VMEM budget: compute from actual block sizes, cap per chip generation ---
    def _nbytes(shape, dtype):
        return int(math.prod(shape)) * jnp.dtype(dtype).itemsize

    weight_block = sum(_nbytes((1,) + w.shape[1:], w.dtype) for w in layer_weights)
    io_block = (_nbytes((BB, T, E), jnp.float32) + _nbytes((BB, S, E), jnp.bfloat16)
                + _nbytes(t_self_mask.shape, jnp.float32) + _nbytes(i_mask.shape, jnp.float32)
                + _nbytes((BB, T, E), out_dtype) + 2 * _nbytes((1, E), jnp.float32))
    temp_bytes = (BB * T * 3 * E * 4                       # qkv f32
                  + 2 * H * BB * T * max(T, S) * 4         # scores / probs f32
                  + BB * T * min(4 * E, _FFN_CHUNK) * 4    # FFN hidden chunk f32
                  + 6 * BB * T * E * 4)                    # LN / ctx / residual temps
    needed = 2 * (weight_block + io_block) + BB * T * E * 4 + temp_bytes
    try:
        vmem_cap = pltpu.get_tpu_info().vmem_capacity_bytes
    except Exception:
        vmem_cap = 128 * 1024 * 1024
    vmem_limit = max(32 * 1024 * 1024, min(int(0.80 * vmem_cap), int(1.25 * needed)))

    # Rough cost hint so XLA schedules the custom call sensibly.
    flops_per_layer = (
        2 * B * T * E * 3 * E + 2 * B * T * E * E          # self QKV + out proj
        + 4 * B * T * T * E                                # self-attn scores + context
        + 2 * B * T * E * E + 2 * B * S * E * 2 * E        # cross Q + fused K/V proj
        + 4 * B * T * S * E + 2 * B * T * E * E            # cross-attn + out proj
        + 4 * B * T * E * 4 * E                            # FFN
    )
    bytes_accessed = sum(int(math.prod(a.shape)) * a.dtype.itemsize
                         for a in ([x, enc, t_self_mask, i_mask] + layer_weights
                                   + [params["last_ln_w"], params["last_ln_b"]]))
    bytes_accessed += B * T * E * jnp.dtype(out_dtype).itemsize
    cost = pl.CostEstimate(flops=int(NL * flops_per_layer),
                           transcendentals=int(NL * B * H * T * (T + S)),
                           bytes_accessed=int(bytes_accessed))

    out = pl.pallas_call(
        functools.partial(decoder_stack_kernel, num_head=num_head),
        out_shape=jax.ShapeDtypeStruct((B, T, E), out_dtype),
        grid=(B // BB, NL),
        in_specs=in_specs,
        out_specs=pl.BlockSpec((BB, T, E), lambda bb, l: (bb, 0, 0)),
        scratch_shapes=[pltpu.VMEM((BB * T, E), jnp.float32)],
        compiler_params=pltpu.CompilerParams(
            dimension_semantics=("parallel", "arbitrary"),
            vmem_limit_bytes=vmem_limit),
        cost_estimate=cost,
    )(x, enc, t_self_mask, i_mask, *layer_weights,
      params["last_ln_w"], params["last_ln_b"])

    return jnp.transpose(out, (1, 0, 2))          # back to (T, B, E)


# ------------------------------ parameter init --------------------------------

def init_decoder_params(key, embed_dim, num_head, n_layers):
    """Per-layer weights stacked along a leading layer axis; matmul weights stored
    pre-transposed (input-dim first) in bf16; biases / LN params f32.  The 1/sqrt(dh)
    attention scale is folded into the Q projection columns (and Q bias) here."""
    E = embed_dim
    dh = E // num_head
    scale = 1.0 / math.sqrt(dh)

    def xavier(k, shape):
        fan_out, fan_in = shape
        bound = (6.0 / (fan_in + fan_out)) ** 0.5
        return jax.random.uniform(k, shape, jnp.float32, minval=-bound, maxval=bound)

    names = ["ln1_w", "ln1_b", "w_qkv_s", "b_qkv_s", "w_out_s", "b_out_s",
             "ln2_w", "ln2_b", "w_q_c", "b_q_c", "w_kv_c", "b_kv_c",
             "w_out_c", "b_out_c", "ln3_w", "ln3_b",
             "w_ffn1", "b_ffn1", "w_ffn2", "b_ffn2"]
    acc = {n: [] for n in names}

    qkv_col_scale = jnp.concatenate(
        [jnp.full((1, E), scale, jnp.float32), jnp.ones((1, 2 * E), jnp.float32)], axis=-1)

    for _ in range(n_layers):
        key, k1, k2, k3, k4, k5, k6 = jax.random.split(key, 7)
        in_w_s = xavier(k1, (3 * E, E))          # PyTorch in_proj_weight layout
        out_w_s = xavier(k2, (E, E))
        in_w_c = xavier(k3, (3 * E, E))
        out_w_c = xavier(k4, (E, E))
        ffn_w1 = xavier(k5, (4 * E, E))
        ffn_w2 = xavier(k6, (E, 4 * E))
        in_w_c_t = in_w_c.T                       # (E, 3E)

        acc["ln1_w"].append(jnp.ones((1, E), jnp.float32))
        acc["ln1_b"].append(jnp.zeros((1, E), jnp.float32))
        acc["w_qkv_s"].append((in_w_s.T * qkv_col_scale).astype(jnp.bfloat16))  # (E, 3E)
        acc["b_qkv_s"].append(jnp.zeros((1, 3 * E), jnp.float32))   # (zero; would be Q-scaled too)
        acc["w_out_s"].append(out_w_s.T.astype(jnp.bfloat16))                   # (E, E)
        acc["b_out_s"].append(jnp.zeros((1, E), jnp.float32))
        acc["ln2_w"].append(jnp.ones((1, E), jnp.float32))
        acc["ln2_b"].append(jnp.zeros((1, E), jnp.float32))
        acc["w_q_c"].append((in_w_c_t[:, 0:E] * scale).astype(jnp.bfloat16))    # (E, E)
        acc["b_q_c"].append(jnp.zeros((1, E), jnp.float32))
        acc["w_kv_c"].append(in_w_c_t[:, E:3 * E].astype(jnp.bfloat16))         # (E, 2E)
        acc["b_kv_c"].append(jnp.zeros((1, 2 * E), jnp.float32))
        acc["w_out_c"].append(out_w_c.T.astype(jnp.bfloat16))
        acc["b_out_c"].append(jnp.zeros((1, E), jnp.float32))
        acc["ln3_w"].append(jnp.ones((1, E), jnp.float32))
        acc["ln3_b"].append(jnp.zeros((1, E), jnp.float32))
        acc["w_ffn1"].append(ffn_w1.T.astype(jnp.bfloat16))                     # (E, 4E)
        acc["b_ffn1"].append(jnp.zeros((1, 4 * E), jnp.float32))
        acc["w_ffn2"].append(ffn_w2.T.astype(jnp.bfloat16))                     # (4E, E)
        acc["b_ffn2"].append(jnp.zeros((1, E), jnp.float32))

    params = {n: jnp.stack(v, axis=0) for n, v in acc.items()}
    params["last_ln_w"] = jnp.ones((1, E), jnp.float32)
    params["last_ln_b"] = jnp.zeros((1, E), jnp.float32)
    return params


# ----------------------------------- main --------------------------------------

if __name__ == "__main__":
    B, T, S, E, H, NL = 2, 8, 8, 32, 4, 2

    key = jax.random.PRNGKey(0)
    k1, k2, kp = jax.random.split(key, 3)

    targets = jax.random.normal(k1, (T, B, E), jnp.float32)       # (seq, batch, embed)
    enc_output = jax.random.normal(k2, (S, B, E), jnp.float32)
    t_self_mask = jnp.zeros((T, T), jnp.float32)                  # additive float mask
    i_mask = jnp.zeros((T, S), jnp.float32)                       # additive float mask

    params = init_decoder_params(kp, E, H, NL)

    out = decoder_forward(targets, enc_output, i_mask, t_self_mask, params, num_head=H)
    out = jax.block_until_ready(out)
    assert out.shape == (T, B, E)
    print("KERNEL_OK")
</pallas_src>

<mosaic_0001>
module attributes {stable_mosaic.version = 11 : i64} {
  func.func @decoder_stack_kernel(%arg0: i32, %arg1: i32, %arg2: memref<1x8x32xf32, #tpu.memory_space<vmem>>, %arg3: memref<1x8x32xbf16, #tpu.memory_space<vmem>>, %arg4: memref<8x8xf32, #tpu.memory_space<vmem>>, %arg5: memref<8x8xf32, #tpu.memory_space<vmem>>, %arg6: memref<1x1x32xf32, #tpu.memory_space<vmem>>, %arg7: memref<1x1x32xf32, #tpu.memory_space<vmem>>, %arg8: memref<1x32x96xbf16, #tpu.memory_space<vmem>>, %arg9: memref<1x1x96xf32, #tpu.memory_space<vmem>>, %arg10: memref<1x32x32xbf16, #tpu.memory_space<vmem>>, %arg11: memref<1x1x32xf32, #tpu.memory_space<vmem>>, %arg12: memref<1x1x32xf32, #tpu.memory_space<vmem>>, %arg13: memref<1x1x32xf32, #tpu.memory_space<vmem>>, %arg14: memref<1x32x32xbf16, #tpu.memory_space<vmem>>, %arg15: memref<1x1x32xf32, #tpu.memory_space<vmem>>, %arg16: memref<1x32x64xbf16, #tpu.memory_space<vmem>>, %arg17: memref<1x1x64xf32, #tpu.memory_space<vmem>>, %arg18: memref<1x32x32xbf16, #tpu.memory_space<vmem>>, %arg19: memref<1x1x32xf32, #tpu.memory_space<vmem>>, %arg20: memref<1x1x32xf32, #tpu.memory_space<vmem>>, %arg21: memref<1x1x32xf32, #tpu.memory_space<vmem>>, %arg22: memref<1x32x128xbf16, #tpu.memory_space<vmem>>, %arg23: memref<1x1x128xf32, #tpu.memory_space<vmem>>, %arg24: memref<1x128x32xbf16, #tpu.memory_space<vmem>>, %arg25: memref<1x1x32xf32, #tpu.memory_space<vmem>>, %arg26: memref<1x32xf32, #tpu.memory_space<vmem>>, %arg27: memref<1x32xf32, #tpu.memory_space<vmem>>, %arg28: memref<1x8x32xf32, #tpu.memory_space<vmem>>, %arg29: memref<8x32xf32, #tpu.memory_space<vmem>>) attributes {dimension_semantics = [#tpu.dimension_semantics<parallel>, #tpu.dimension_semantics<arbitrary>], iteration_bounds = array<i64: 2, 2>, scalar_prefetch = 0 : i64, scratch_operands = 1 : i64, tpu.core_type = #tpu.core_type<tc>, window_params = [{transform_indices = @transform_0, window_bounds = array<i64: 1, 8, 32>}, {transform_indices = @transform_1, window_bounds = array<i64: 1, 8, 32>}, {pipeline_mode = #tpu.pipeline_mode<synchronous>, transform_indices = @transform_2, window_bounds = array<i64: 8, 8>}, {pipeline_mode = #tpu.pipeline_mode<synchronous>, transform_indices = @transform_3, window_bounds = array<i64: 8, 8>}, {transform_indices = @transform_4, window_bounds = array<i64: 1, 1, 32>}, {transform_indices = @transform_5, window_bounds = array<i64: 1, 1, 32>}, {transform_indices = @transform_6, window_bounds = array<i64: 1, 32, 96>}, {transform_indices = @transform_7, window_bounds = array<i64: 1, 1, 96>}, {transform_indices = @transform_8, window_bounds = array<i64: 1, 32, 32>}, {transform_indices = @transform_9, window_bounds = array<i64: 1, 1, 32>}, {transform_indices = @transform_10, window_bounds = array<i64: 1, 1, 32>}, {transform_indices = @transform_11, window_bounds = array<i64: 1, 1, 32>}, {transform_indices = @transform_12, window_bounds = array<i64: 1, 32, 32>}, {transform_indices = @transform_13, window_bounds = array<i64: 1, 1, 32>}, {transform_indices = @transform_14, window_bounds = array<i64: 1, 32, 64>}, {transform_indices = @transform_15, window_bounds = array<i64: 1, 1, 64>}, {transform_indices = @transform_16, window_bounds = array<i64: 1, 32, 32>}, {transform_indices = @transform_17, window_bounds = array<i64: 1, 1, 32>}, {transform_indices = @transform_18, window_bounds = array<i64: 1, 1, 32>}, {transform_indices = @transform_19, window_bounds = array<i64: 1, 1, 32>}, {transform_indices = @transform_20, window_bounds = array<i64: 1, 32, 128>}, {transform_indices = @transform_21, window_bounds = array<i64: 1, 1, 128>}, {transform_indices = @transform_22, window_bounds = array<i64: 1, 128, 32>}, {transform_indices = @transform_23, window_bounds = array<i64: 1, 1, 32>}, {pipeline_mode = #tpu.pipeline_mode<synchronous>, transform_indices = @transform_24, window_bounds = array<i64: 1, 32>}, {pipeline_mode = #tpu.pipeline_mode<synchronous>, transform_indices = @transform_25, window_bounds = array<i64: 1, 32>}, {transform_indices = @transform_26, window_bounds = array<i64: 1, 8, 32>}]} {
    %c0_i32 = arith.constant 0 : i32
    %0 = arith.cmpi eq, %arg1, %c0_i32 : i32
    %1 = arith.extui %0 : i1 to i32
    %c0_i32_0 = arith.constant 0 : i32
    %2 = arith.cmpi ne, %1, %c0_i32_0 : i32
    scf.if %2 {
      %c0_102 = arith.constant 0 : index
      %c0_103 = arith.constant 0 : index
      %c0_104 = arith.constant 0 : index
      %299 = vector.load %arg2[%c0_102, %c0_103, %c0_104] : memref<1x8x32xf32, #tpu.memory_space<vmem>>, vector<1x8x32xf32>
      %300 = vector.shape_cast %299 : vector<1x8x32xf32> to vector<8x32xf32>
      %c0_105 = arith.constant 0 : index
      %c0_106 = arith.constant 0 : index
      %301 = vector.load %arg29[%c0_105, %c0_106] : memref<8x32xf32, #tpu.memory_space<vmem>>, vector<8x32xf32>
      tpu.vector_store %arg29[%c0_105, %c0_106], %300 {strides = array<i32>} : memref<8x32xf32, #tpu.memory_space<vmem>>, vector<8x32xf32>,
    } else {
    }
    %c0 = arith.constant 0 : index
    %c0_1 = arith.constant 0 : index
    %3 = vector.load %arg29[%c0, %c0_1] : memref<8x32xf32, #tpu.memory_space<vmem>>, vector<8x32xf32>
    %c0_2 = arith.constant 0 : index
    %c0_3 = arith.constant 0 : index
    %c0_4 = arith.constant 0 : index
    %4 = vector.load %arg6[%c0_2, %c0_3, %c0_4] : memref<1x1x32xf32, #tpu.memory_space<vmem>>, vector<1x1x32xf32>
    %5 = vector.shape_cast %4 : vector<1x1x32xf32> to vector<1x32xf32>
    %c0_5 = arith.constant 0 : index
    %c0_6 = arith.constant 0 : index
    %c0_7 = arith.constant 0 : index
    %6 = vector.load %arg7[%c0_5, %c0_6, %c0_7] : memref<1x1x32xf32, #tpu.memory_space<vmem>>, vector<1x1x32xf32>
    %7 = vector.shape_cast %6 : vector<1x1x32xf32> to vector<1x32xf32>
    %cst = arith.constant dense<0.000000e+00> : vector<8xf32>
    %8 = vector.multi_reduction <add>, %3, %cst [1] : vector<8x32xf32> to vector<8xf32>
    %9 = vector.shape_cast %8 : vector<8xf32> to vector<8x1xf32>
    %cst_8 = arith.constant 3.200000e+01 : f32
    %10 = vector.broadcast %cst_8 : f32 to vector<8x1xf32>
    %11 = arith.divf %9, %10 : vector<8x1xf32>
    %12 = vector.broadcast %11 : vector<8x1xf32> to vector<8x32xf32>
    %13 = arith.subf %3, %12 : vector<8x32xf32>
    %14 = arith.mulf %13, %13 : vector<8x32xf32>
    %cst_9 = arith.constant dense<0.000000e+00> : vector<8xf32>
    %15 = vector.multi_reduction <add>, %14, %cst_9 [1] : vector<8x32xf32> to vector<8xf32>
    %16 = vector.shape_cast %15 : vector<8xf32> to vector<8x1xf32>
    %cst_10 = arith.constant 3.200000e+01 : f32
    %17 = vector.broadcast %cst_10 : f32 to vector<8x1xf32>
    %18 = arith.divf %16, %17 : vector<8x1xf32>
    %cst_11 = arith.constant 9.99999997E-7 : f32
    %19 = vector.broadcast %cst_11 : f32 to vector<8x1xf32>
    %20 = arith.addf %18, %19 : vector<8x1xf32>
    %21 = math.rsqrt %20 : vector<8x1xf32>
    %22 = vector.broadcast %21 : vector<8x1xf32> to vector<8x32xf32>
    %23 = arith.mulf %13, %22 : vector<8x32xf32>
    %24 = vector.broadcast %5 : vector<1x32xf32> to vector<8x32xf32>
    %25 = arith.mulf %23, %24 : vector<8x32xf32>
    %26 = vector.broadcast %7 : vector<1x32xf32> to vector<8x32xf32>
    %27 = arith.addf %25, %26 : vector<8x32xf32>
    %28 = arith.truncf %27 : vector<8x32xf32> to vector<8x32xbf16>
    %c0_12 = arith.constant 0 : index
    %c0_13 = arith.constant 0 : index
    %c0_14 = arith.constant 0 : index
    %29 = vector.load %arg8[%c0_12, %c0_13, %c0_14] : memref<1x32x96xbf16, #tpu.memory_space<vmem>>, vector<1x32x96xbf16>
    %30 = vector.shape_cast %29 : vector<1x32x96xbf16> to vector<32x96xbf16>
    %cst_15 = arith.constant dense<0.000000e+00> : vector<8x96xf32>
    %31 = tpu.matmul %28, %30, %cst_15 {dimension_numbers = #tpu.dot_dimension_numbers<[1], [0], [0], [1], [0, 0, 1, 1], [], []>} : vector<8x32xbf16>, vector<32x96xbf16>, vector<8x96xf32> -> vector<8x96xf32>
    %c0_16 = arith.constant 0 : index
    %c0_17 = arith.constant 0 : index
    %c0_18 = arith.constant 0 : index
    %32 = vector.load %arg9[%c0_16, %c0_17, %c0_18] : memref<1x1x96xf32, #tpu.memory_space<vmem>>, vector<1x1x96xf32>
    %33 = vector.shape_cast %32 : vector<1x1x96xf32> to vector<1x96xf32>
    %34 = vector.broadcast %33 : vector<1x96xf32> to vector<8x96xf32>
    %35 = arith.addf %31, %34 : vector<8x96xf32>
    %36 = vector.extract_strided_slice %35 {offsets = [0, 0], sizes = [8, 32], strides = [1, 1]} : vector<8x96xf32> to vector<8x32xf32>
    %37 = vector.extract_strided_slice %35 {offsets = [0, 32], sizes = [8, 32], strides = [1, 1]} : vector<8x96xf32> to vector<8x32xf32>
    %38 = vector.extract_strided_slice %35 {offsets = [0, 64], sizes = [8, 32], strides = [1, 1]} : vector<8x96xf32> to vector<8x32xf32>
    %c0_19 = arith.constant 0 : index
    %c0_20 = arith.constant 0 : index
    %39 = vector.load %arg4[%c0_19, %c0_20] : memref<8x8xf32, #tpu.memory_space<vmem>>, vector<8x8xf32>
    %40 = vector.extract_strided_slice %36 {offsets = [0, 0], sizes = [8, 8], strides = [1, 1]} : vector<8x32xf32> to vector<8x8xf32>
    %41 = vector.shape_cast %40 : vector<8x8xf32> to vector<1x8x8xf32>
    %42 = vector.extract_strided_slice %36 {offsets = [0, 8], sizes = [8, 8], strides = [1, 1]} : vector<8x32xf32> to vector<8x8xf32>
    %43 = vector.shape_cast %42 : vector<8x8xf32> to vector<1x8x8xf32>
    %44 = vector.extract_strided_slice %36 {offsets = [0, 16], sizes = [8, 8], strides = [1, 1]} : vector<8x32xf32> to vector<8x8xf32>
    %45 = vector.shape_cast %44 : vector<8x8xf32> to vector<1x8x8xf32>
    %46 = vector.extract_strided_slice %36 {offsets = [0, 24], sizes = [8, 8], strides = [1, 1]} : vector<8x32xf32> to vector<8x8xf32>
    %47 = vector.shape_cast %46 : vector<8x8xf32> to vector<1x8x8xf32>
    %48 = vector.shape_cast %41 : vector<1x8x8xf32> to vector<1x1x8x8xf32>
    %49 = vector.shape_cast %43 : vector<1x8x8xf32> to vector<1x1x8x8xf32>
    %50 = vector.shape_cast %45 : vector<1x8x8xf32> to vector<1x1x8x8xf32>
    %51 = vector.shape_cast %47 : vector<1x8x8xf32> to vector<1x1x8x8xf32>
    %52 = tpu.concatenate %48, %49, %50, %51 in 0 : vector<1x1x8x8xf32>, vector<1x1x8x8xf32>, vector<1x1x8x8xf32>, vector<1x1x8x8xf32> -> vector<4x1x8x8xf32>
    %53 = vector.shape_cast %52 : vector<4x1x8x8xf32> to vector<4x8x8xf32>
    %54 = arith.truncf %53 : vector<4x8x8xf32> to vector<4x8x8xbf16>
    %55 = vector.extract_strided_slice %37 {offsets = [0, 0], sizes = [8, 8], strides = [1, 1]} : vector<8x32xf32> to vector<8x8xf32>
    %56 = vector.shape_cast %55 : vector<8x8xf32> to vector<1x8x8xf32>
    %57 = vector.extract_strided_slice %37 {offsets = [0, 8], sizes = [8, 8], strides = [1, 1]} : vector<8x32xf32> to vector<8x8xf32>
    %58 = vector.shape_cast %57 : vector<8x8xf32> to vector<1x8x8xf32>
    %59 = vector.extract_strided_slice %37 {offsets = [0, 16], sizes = [8, 8], strides = [1, 1]} : vector<8x32xf32> to vector<8x8xf32>
    %60 = vector.shape_cast %59 : vector<8x8xf32> to vector<1x8x8xf32>
    %61 = vector.extract_strided_slice %37 {offsets = [0, 24], sizes = [8, 8], strides = [1, 1]} : vector<8x32xf32> to vector<8x8xf32>
    %62 = vector.shape_cast %61 : vector<8x8xf32> to vector<1x8x8xf32>
    %63 = vector.shape_cast %56 : vector<1x8x8xf32> to vector<1x1x8x8xf32>
    %64 = vector.shape_cast %58 : vector<1x8x8xf32> to vector<1x1x8x8xf32>
    %65 = vector.shape_cast %60 : vector<1x8x8xf32> to vector<1x1x8x8xf32>
    %66 = vector.shape_cast %62 : vector<1x8x8xf32> to vector<1x1x8x8xf32>
    %67 = tpu.concatenate %63, %64, %65, %66 in 0 : vector<1x1x8x8xf32>, vector<1x1x8x8xf32>, vector<1x1x8x8xf32>, vector<1x1x8x8xf32> -> vector<4x1x8x8xf32>
    %68 = vector.shape_cast %67 : vector<4x1x8x8xf32> to vector<4x8x8xf32>
    %69 = arith.truncf %68 : vector<4x8x8xf32> to vector<4x8x8xbf16>
    %70 = vector.extract_strided_slice %38 {offsets = [0, 0], sizes = [8, 8], strides = [1, 1]} : vector<8x32xf32> to vector<8x8xf32>
    %71 = vector.shape_cast %70 : vector<8x8xf32> to vector<1x8x8xf32>
    %72 = vector.extract_strided_slice %38 {offsets = [0, 8], sizes = [8, 8], strides = [1, 1]} : vector<8x32xf32> to vector<8x8xf32>
    %73 = vector.shape_cast %72 : vector<8x8xf32> to vector<1x8x8xf32>
    %74 = vector.extract_strided_slice %38 {offsets = [0, 16], sizes = [8, 8], strides = [1, 1]} : vector<8x32xf32> to vector<8x8xf32>
    %75 = vector.shape_cast %74 : vector<8x8xf32> to vector<1x8x8xf32>
    %76 = vector.extract_strided_slice %38 {offsets = [0, 24], sizes = [8, 8], strides = [1, 1]} : vector<8x32xf32> to vector<8x8xf32>
    %77 = vector.shape_cast %76 : vector<8x8xf32> to vector<1x8x8xf32>
    %78 = vector.shape_cast %71 : vector<1x8x8xf32> to vector<1x1x8x8xf32>
    %79 = vector.shape_cast %73 : vector<1x8x8xf32> to vector<1x1x8x8xf32>
    %80 = vector.shape_cast %75 : vector<1x8x8xf32> to vector<1x1x8x8xf32>
    %81 = vector.shape_cast %77 : vector<1x8x8xf32> to vector<1x1x8x8xf32>
    %82 = tpu.concatenate %78, %79, %80, %81 in 0 : vector<1x1x8x8xf32>, vector<1x1x8x8xf32>, vector<1x1x8x8xf32>, vector<1x1x8x8xf32> -> vector<4x1x8x8xf32>
    %83 = vector.shape_cast %82 : vector<4x1x8x8xf32> to vector<4x8x8xf32>
    %84 = arith.truncf %83 : vector<4x8x8xf32> to vector<4x8x8xbf16>
    "tpu.trace_start"() <{level = 10 : i32, message = "ntd,nsd->nts"}> : () -> ()
    %cst_21 = arith.constant dense<0.000000e+00> : vector<4x8x8xf32>
    %85 = tpu.matmul %54, %69, %cst_21 {dimension_numbers = #tpu.dot_dimension_numbers<[2], [2], [1], [1], [0, 0, 0, 1, 1, 1], [0], [0]>} : vector<4x8x8xbf16>, vector<4x8x8xbf16>, vector<4x8x8xf32> -> vector<4x8x8xf32>
    "tpu.trace_stop"() : () -> ()
    %86 = vector.shape_cast %39 : vector<8x8xf32> to vector<1x8x8xf32>
    %87 = vector.broadcast %86 : vector<1x8x8xf32> to vector<4x8x8xf32>
    %88 = arith.addf %85, %87 : vector<4x8x8xf32>
    %cst_22 = arith.constant dense<0xFF800000> : vector<4x8xf32>
    %89 = vector.multi_reduction <maximumf>, %88, %cst_22 [2] : vector<4x8x8xf32> to vector<4x8xf32>
    %90 = vector.shape_cast %89 : vector<4x8xf32> to vector<4x8x1xf32>
    %91 = vector.broadcast %90 : vector<4x8x1xf32> to vector<4x8x8xf32>
    %92 = arith.subf %88, %91 : vector<4x8x8xf32>
    %93 = math.exp %92 : vector<4x8x8xf32>
    %cst_23 = arith.constant dense<0.000000e+00> : vector<4x8xf32>
    %94 = vector.multi_reduction <add>, %93, %cst_23 [2] : vector<4x8x8xf32> to vector<4x8xf32>
    %95 = vector.shape_cast %94 : vector<4x8xf32> to vector<4x8x1xf32>
    %96 = tpu.reciprocal %95 {approx = true} : vector<4x8x1xf32> -> vector<4x8x1xf32>
    %97 = vector.broadcast %96 : vector<4x8x1xf32> to vector<4x8x8xf32>
    %98 = arith.mulf %93, %97 : vector<4x8x8xf32>
    %99 = arith.truncf %98 : vector<4x8x8xf32> to vector<4x8x8xbf16>
    "tpu.trace_start"() <{level = 10 : i32, message = "nts,nsd->ntd"}> : () -> ()
    %cst_24 = arith.constant dense<0.000000e+00> : vector<4x8x8xf32>
    %100 = tpu.matmul %99, %84, %cst_24 {dimension_numbers = #tpu.dot_dimension_numbers<[2], [1], [1], [2], [0, 0, 0, 1, 1, 2], [0], [0]>} : vector<4x8x8xbf16>, vector<4x8x8xbf16>, vector<4x8x8xf32> -> vector<4x8x8xf32>
    "tpu.trace_stop"() : () -> ()
    %101 = vector.shape_cast %100 : vector<4x8x8xf32> to vector<4x1x8x8xf32>
    %102 = vector.extract_strided_slice %101 {offsets = [0, 0, 0, 0], sizes = [1, 1, 8, 8], strides = [1, 1, 1, 1]} : vector<4x1x8x8xf32> to vector<1x1x8x8xf32>
    %103 = vector.shape_cast %102 : vector<1x1x8x8xf32> to vector<1x8x8xf32>
    %104 = vector.shape_cast %103 : vector<1x8x8xf32> to vector<8x8xf32>
    %105 = vector.extract_strided_slice %101 {offsets = [1, 0, 0, 0], sizes = [1, 1, 8, 8], strides = [1, 1, 1, 1]} : vector<4x1x8x8xf32> to vector<1x1x8x8xf32>
    %106 = vector.shape_cast %105 : vector<1x1x8x8xf32> to vector<1x8x8xf32>
    %107 = vector.shape_cast %106 : vector<1x8x8xf32> to vector<8x8xf32>
    %108 = vector.extract_strided_slice %101 {offsets = [2, 0, 0, 0], sizes = [1, 1, 8, 8], strides = [1, 1, 1, 1]} : vector<4x1x8x8xf32> to vector<1x1x8x8xf32>
    %109 = vector.shape_cast %108 : vector<1x1x8x8xf32> to vector<1x8x8xf32>
    %110 = vector.shape_cast %109 : vector<1x8x8xf32> to vector<8x8xf32>
    %111 = vector.extract_strided_slice %101 {offsets = [3, 0, 0, 0], sizes = [1, 1, 8, 8], strides = [1, 1, 1, 1]} : vector<4x1x8x8xf32> to vector<1x1x8x8xf32>
    %112 = vector.shape_cast %111 : vector<1x1x8x8xf32> to vector<1x8x8xf32>
    %113 = vector.shape_cast %112 : vector<1x8x8xf32> to vector<8x8xf32>
    %114 = tpu.concatenate %104, %107, %110, %113 in 1 : vector<8x8xf32>, vector<8x8xf32>, vector<8x8xf32>, vector<8x8xf32> -> vector<8x32xf32>
    %115 = arith.truncf %114 : vector<8x32xf32> to vector<8x32xbf16>
    %c0_25 = arith.constant 0 : index
    %c0_26 = arith.constant 0 : index
    %c0_27 = arith.constant 0 : index
    %116 = vector.load %arg10[%c0_25, %c0_26, %c0_27] : memref<1x32x32xbf16, #tpu.memory_space<vmem>>, vector<1x32x32xbf16>
    %117 = vector.shape_cast %116 : vector<1x32x32xbf16> to vector<32x32xbf16>
    %cst_28 = arith.constant dense<0.000000e+00> : vector<8x32xf32>
    %118 = tpu.matmul %115, %117, %cst_28 {dimension_numbers = #tpu.dot_dimension_numbers<[1], [0], [0], [1], [0, 0, 1, 1], [], []>} : vector<8x32xbf16>, vector<32x32xbf16>, vector<8x32xf32> -> vector<8x32xf32>
    %119 = arith.addf %3, %118 : vector<8x32xf32>
    %c0_29 = arith.constant 0 : index
    %c0_30 = arith.constant 0 : index
    %c0_31 = arith.constant 0 : index
    %120 = vector.load %arg11[%c0_29, %c0_30, %c0_31] : memref<1x1x32xf32, #tpu.memory_space<vmem>>, vector<1x1x32xf32>
    %121 = vector.shape_cast %120 : vector<1x1x32xf32> to vector<1x32xf32>
    %122 = vector.broadcast %121 : vector<1x32xf32> to vector<8x32xf32>
    %123 = arith.addf %119, %122 : vector<8x32xf32>
    %c0_32 = arith.constant 0 : index
    %c0_33 = arith.constant 0 : index
    %c0_34 = arith.constant 0 : index
    %124 = vector.load %arg12[%c0_32, %c0_33, %c0_34] : memref<1x1x32xf32, #tpu.memory_space<vmem>>, vector<1x1x32xf32>
    %125 = vector.shape_cast %124 : vector<1x1x32xf32> to vector<1x32xf32>
    %c0_35 = arith.constant 0 : index
    %c0_36 = arith.constant 0 : index
    %c0_37 = arith.constant 0 : index
    %126 = vector.load %arg13[%c0_35, %c0_36, %c0_37] : memref<1x1x32xf32, #tpu.memory_space<vmem>>, vector<1x1x32xf32>
    %127 = vector.shape_cast %126 : vector<1x1x32xf32> to vector<1x32xf32>
    %cst_38 = arith.constant dense<0.000000e+00> : vector<8xf32>
    %128 = vector.multi_reduction <add>, %123, %cst_38 [1] : vector<8x32xf32> to vector<8xf32>
    %129 = vector.shape_cast %128 : vector<8xf32> to vector<8x1xf32>
    %cst_39 = arith.constant 3.200000e+01 : f32
    %130 = vector.broadcast %cst_39 : f32 to vector<8x1xf32>
    %131 = arith.divf %129, %130 : vector<8x1xf32>
    %132 = vector.broadcast %131 : vector<8x1xf32> to vector<8x32xf32>
    %133 = arith.subf %123, %132 : vector<8x32xf32>
    %134 = arith.mulf %133, %133 : vector<8x32xf32>
    %cst_40 = arith.constant dense<0.000000e+00> : vector<8xf32>
    %135 = vector.multi_reduction <add>, %134, %cst_40 [1] : vector<8x32xf32> to vector<8xf32>
    %136 = vector.shape_cast %135 : vector<8xf32> to vector<8x1xf32>
    %cst_41 = arith.constant 3.200000e+01 : f32
    %137 = vector.broadcast %cst_41 : f32 to vector<8x1xf32>
    %138 = arith.divf %136, %137 : vector<8x1xf32>
    %cst_42 = arith.constant 9.99999997E-7 : f32
    %139 = vector.broadcast %cst_42 : f32 to vector<8x1xf32>
    %140 = arith.addf %138, %139 : vector<8x1xf32>
    %141 = math.rsqrt %140 : vector<8x1xf32>
    %142 = vector.broadcast %141 : vector<8x1xf32> to vector<8x32xf32>
    %143 = arith.mulf %133, %142 : vector<8x32xf32>
    %144 = vector.broadcast %125 : vector<1x32xf32> to vector<8x32xf32>
    %145 = arith.mulf %143, %144 : vector<8x32xf32>
    %146 = vector.broadcast %127 : vector<1x32xf32> to vector<8x32xf32>
    %147 = arith.addf %145, %146 : vector<8x32xf32>
    %148 = arith.truncf %147 : vector<8x32xf32> to vector<8x32xbf16>
    %c0_43 = arith.constant 0 : index
    %c0_44 = arith.constant 0 : index
    %c0_45 = arith.constant 0 : index
    %149 = vector.load %arg14[%c0_43, %c0_44, %c0_45] : memref<1x32x32xbf16, #tpu.memory_space<vmem>>, vector<1x32x32xbf16>
    %150 = vector.shape_cast %149 : vector<1x32x32xbf16> to vector<32x32xbf16>
    %cst_46 = arith.constant dense<0.000000e+00> : vector<8x32xf32>
    %151 = tpu.matmul %148, %150, %cst_46 {dimension_numbers = #tpu.dot_dimension_numbers<[1], [0], [0], [1], [0, 0, 1, 1], [], []>} : vector<8x32xbf16>, vector<32x32xbf16>, vector<8x32xf32> -> vector<8x32xf32>
    %c0_47 = arith.constant 0 : index
    %c0_48 = arith.constant 0 : index
    %c0_49 = arith.constant 0 : index
    %152 = vector.load %arg15[%c0_47, %c0_48, %c0_49] : memref<1x1x32xf32, #tpu.memory_space<vmem>>, vector<1x1x32xf32>
    %153 = vector.shape_cast %152 : vector<1x1x32xf32> to vector<1x32xf32>
    %154 = vector.broadcast %153 : vector<1x32xf32> to vector<8x32xf32>
    %155 = arith.addf %151, %154 : vector<8x32xf32>
    %c0_50 = arith.constant 0 : index
    %c0_51 = arith.constant 0 : index
    %c0_52 = arith.constant 0 : index
    %156 = vector.load %arg3[%c0_50, %c0_51, %c0_52] : memref<1x8x32xbf16, #tpu.memory_space<vmem>>, vector<1x8x32xbf16>
    %157 = vector.shape_cast %156 : vector<1x8x32xbf16> to vector<8x32xbf16>
    %c0_53 = arith.constant 0 : index
    %c0_54 = arith.constant 0 : index
    %c0_55 = arith.constant 0 : index
    %158 = vector.load %arg16[%c0_53, %c0_54, %c0_55] : memref<1x32x64xbf16, #tpu.memory_space<vmem>>, vector<1x32x64xbf16>
    %159 = vector.shape_cast %158 : vector<1x32x64xbf16> to vector<32x64xbf16>
    %cst_56 = arith.constant dense<0.000000e+00> : vector<8x64xf32>
    %160 = tpu.matmul %157, %159, %cst_56 {dimension_numbers = #tpu.dot_dimension_numbers<[1], [0], [0], [1], [0, 0, 1, 1], [], []>} : vector<8x32xbf16>, vector<32x64xbf16>, vector<8x64xf32> -> vector<8x64xf32>
    %c0_57 = arith.constant 0 : index
    %c0_58 = arith.constant 0 : index
    %c0_59 = arith.constant 0 : index
    %161 = vector.load %arg17[%c0_57, %c0_58, %c0_59] : memref<1x1x64xf32, #tpu.memory_space<vmem>>, vector<1x1x64xf32>
    %162 = vector.shape_cast %161 : vector<1x1x64xf32> to vector<1x64xf32>
    %163 = vector.broadcast %162 : vector<1x64xf32> to vector<8x64xf32>
    %164 = arith.addf %160, %163 : vector<8x64xf32>
    %165 = vector.extract_strided_slice %164 {offsets = [0, 0], sizes = [8, 32], strides = [1, 1]} : vector<8x64xf32> to vector<8x32xf32>
    %166 = vector.extract_strided_slice %164 {offsets = [0, 32], sizes = [8, 32], strides = [1, 1]} : vector<8x64xf32> to vector<8x32xf32>
    %c0_60 = arith.constant 0 : index
    %c0_61 = arith.constant 0 : index
    %167 = vector.load %arg5[%c0_60, %c0_61] : memref<8x8xf32, #tpu.memory_space<vmem>>, vector<8x8xf32>
    %168 = vector.extract_strided_slice %155 {offsets = [0, 0], sizes = [8, 8], strides = [1, 1]} : vector<8x32xf32> to vector<8x8xf32>
    %169 = vector.shape_cast %168 : vector<8x8xf32> to vector<1x8x8xf32>
    %170 = vector.extract_strided_slice %155 {offsets = [0, 8], sizes = [8, 8], strides = [1, 1]} : vector<8x32xf32> to vector<8x8xf32>
    %171 = vector.shape_cast %170 : vector<8x8xf32> to vector<1x8x8xf32>
    %172 = vector.extract_strided_slice %155 {offsets = [0, 16], sizes = [8, 8], strides = [1, 1]} : vector<8x32xf32> to vector<8x8xf32>
    %173 = vector.shape_cast %172 : vector<8x8xf32> to vector<1x8x8xf32>
    %174 = vector.extract_strided_slice %155 {offsets = [0, 24], sizes = [8, 8], strides = [1, 1]} : vector<8x32xf32> to vector<8x8xf32>
    %175 = vector.shape_cast %174 : vector<8x8xf32> to vector<1x8x8xf32>
    %176 = vector.shape_cast %169 : vector<1x8x8xf32> to vector<1x1x8x8xf32>
    %177 = vector.shape_cast %171 : vector<1x8x8xf32> to vector<1x1x8x8xf32>
    %178 = vector.shape_cast %173 : vector<1x8x8xf32> to vector<1x1x8x8xf32>
    %179 = vector.shape_cast %175 : vector<1x8x8xf32> to vector<1x1x8x8xf32>
    %180 = tpu.concatenate %176, %177, %178, %179 in 0 : vector<1x1x8x8xf32>, vector<1x1x8x8xf32>, vector<1x1x8x8xf32>, vector<1x1x8x8xf32> -> vector<4x1x8x8xf32>
    %181 = vector.shape_cast %180 : vector<4x1x8x8xf32> to vector<4x8x8xf32>
    %182 = arith.truncf %181 : vector<4x8x8xf32> to vector<4x8x8xbf16>
    %183 = vector.extract_strided_slice %165 {offsets = [0, 0], sizes = [8, 8], strides = [1, 1]} : vector<8x32xf32> to vector<8x8xf32>
    %184 = vector.shape_cast %183 : vector<8x8xf32> to vector<1x8x8xf32>
    %185 = vector.extract_strided_slice %165 {offsets = [0, 8], sizes = [8, 8], strides = [1, 1]} : vector<8x32xf32> to vector<8x8xf32>
    %186 = vector.shape_cast %185 : vector<8x8xf32> to vector<1x8x8xf32>
    %187 = vector.extract_strided_slice %165 {offsets = [0, 16], sizes = [8, 8], strides = [1, 1]} : vector<8x32xf32> to vector<8x8xf32>
    %188 = vector.shape_cast %187 : vector<8x8xf32> to vector<1x8x8xf32>
    %189 = vector.extract_strided_slice %165 {offsets = [0, 24], sizes = [8, 8], strides = [1, 1]} : vector<8x32xf32> to vector<8x8xf32>
    %190 = vector.shape_cast %189 : vector<8x8xf32> to vector<1x8x8xf32>
    %191 = vector.shape_cast %184 : vector<1x8x8xf32> to vector<1x1x8x8xf32>
    %192 = vector.shape_cast %186 : vector<1x8x8xf32> to vector<1x1x8x8xf32>
    %193 = vector.shape_cast %188 : vector<1x8x8xf32> to vector<1x1x8x8xf32>
    %194 = vector.shape_cast %190 : vector<1x8x8xf32> to vector<1x1x8x8xf32>
    %195 = tpu.concatenate %191, %192, %193, %194 in 0 : vector<1x1x8x8xf32>, vector<1x1x8x8xf32>, vector<1x1x8x8xf32>, vector<1x1x8x8xf32> -> vector<4x1x8x8xf32>
    %196 = vector.shape_cast %195 : vector<4x1x8x8xf32> to vector<4x8x8xf32>
    %197 = arith.truncf %196 : vector<4x8x8xf32> to vector<4x8x8xbf16>
    %198 = vector.extract_strided_slice %166 {offsets = [0, 0], sizes = [8, 8], strides = [1, 1]} : vector<8x32xf32> to vector<8x8xf32>
    %199 = vector.shape_cast %198 : vector<8x8xf32> to vector<1x8x8xf32>
    %200 = vector.extract_strided_slice %166 {offsets = [0, 8], sizes = [8, 8], strides = [1, 1]} : vector<8x32xf32> to vector<8x8xf32>
    %201 = vector.shape_cast %200 : vector<8x8xf32> to vector<1x8x8xf32>
    %202 = vector.extract_strided_slice %166 {offsets = [0, 16], sizes = [8, 8], strides = [1, 1]} : vector<8x32xf32> to vector<8x8xf32>
    %203 = vector.shape_cast %202 : vector<8x8xf32> to vector<1x8x8xf32>
    %204 = vector.extract_strided_slice %166 {offsets = [0, 24], sizes = [8, 8], strides = [1, 1]} : vector<8x32xf32> to vector<8x8xf32>
    %205 = vector.shape_cast %204 : vector<8x8xf32> to vector<1x8x8xf32>
    %206 = vector.shape_cast %199 : vector<1x8x8xf32> to vector<1x1x8x8xf32>
    %207 = vector.shape_cast %201 : vector<1x8x8xf32> to vector<1x1x8x8xf32>
    %208 = vector.shape_cast %203 : vector<1x8x8xf32> to vector<1x1x8x8xf32>
    %209 = vector.shape_cast %205 : vector<1x8x8xf32> to vector<1x1x8x8xf32>
    %210 = tpu.concatenate %206, %207, %208, %209 in 0 : vector<1x1x8x8xf32>, vector<1x1x8x8xf32>, vector<1x1x8x8xf32>, vector<1x1x8x8xf32> -> vector<4x1x8x8xf32>
    %211 = vector.shape_cast %210 : vector<4x1x8x8xf32> to vector<4x8x8xf32>
    %212 = arith.truncf %211 : vector<4x8x8xf32> to vector<4x8x8xbf16>
    "tpu.trace_start"() <{level = 10 : i32, message = "ntd,nsd->nts"}> : () -> ()
    %cst_62 = arith.constant dense<0.000000e+00> : vector<4x8x8xf32>
    %213 = tpu.matmul %182, %197, %cst_62 {dimension_numbers = #tpu.dot_dimension_numbers<[2], [2], [1], [1], [0, 0, 0, 1, 1, 1], [0], [0]>} : vector<4x8x8xbf16>, vector<4x8x8xbf16>, vector<4x8x8xf32> -> vector<4x8x8xf32>
    "tpu.trace_stop"() : () -> ()
    %214 = vector.shape_cast %167 : vector<8x8xf32> to vector<1x8x8xf32>
    %215 = vector.broadcast %214 : vector<1x8x8xf32> to vector<4x8x8xf32>
    %216 = arith.addf %213, %215 : vector<4x8x8xf32>
    %cst_63 = arith.constant dense<0xFF800000> : vector<4x8xf32>
    %217 = vector.multi_reduction <maximumf>, %216, %cst_63 [2] : vector<4x8x8xf32> to vector<4x8xf32>
    %218 = vector.shape_cast %217 : vector<4x8xf32> to vector<4x8x1xf32>
    %219 = vector.broadcast %218 : vector<4x8x1xf32> to vector<4x8x8xf32>
    %220 = arith.subf %216, %219 : vector<4x8x8xf32>
    %221 = math.exp %220 : vector<4x8x8xf32>
    %cst_64 = arith.constant dense<0.000000e+00> : vector<4x8xf32>
    %222 = vector.multi_reduction <add>, %221, %cst_64 [2] : vector<4x8x8xf32> to vector<4x8xf32>
    %223 = vector.shape_cast %222 : vector<4x8xf32> to vector<4x8x1xf32>
    %224 = tpu.reciprocal %223 {approx = true} : vector<4x8x1xf32> -> vector<4x8x1xf32>
    %225 = vector.broadcast %224 : vector<4x8x1xf32> to vector<4x8x8xf32>
    %226 = arith.mulf %221, %225 : vector<4x8x8xf32>
    %227 = arith.truncf %226 : vector<4x8x8xf32> to vector<4x8x8xbf16>
    "tpu.trace_start"() <{level = 10 : i32, message = "nts,nsd->ntd"}> : () -> ()
    %cst_65 = arith.constant dense<0.000000e+00> : vector<4x8x8xf32>
    %228 = tpu.matmul %227, %212, %cst_65 {dimension_numbers = #tpu.dot_dimension_numbers<[2], [1], [1], [2], [0, 0, 0, 1, 1, 2], [0], [0]>} : vector<4x8x8xbf16>, vector<4x8x8xbf16>, vector<4x8x8xf32> -> vector<4x8x8xf32>
    "tpu.trace_stop"() : () -> ()
    %229 = vector.shape_cast %228 : vector<4x8x8xf32> to vector<4x1x8x8xf32>
    %230 = vector.extract_strided_slice %229 {offsets = [0, 0, 0, 0], sizes = [1, 1, 8, 8], strides = [1, 1, 1, 1]} : vector<4x1x8x8xf32> to vector<1x1x8x8xf32>
    %231 = vector.shape_cast %230 : vector<1x1x8x8xf32> to vector<1x8x8xf32>
    %232 = vector.shape_cast %231 : vector<1x8x8xf32> to vector<8x8xf32>
    %233 = vector.extract_strided_slice %229 {offsets = [1, 0, 0, 0], sizes = [1, 1, 8, 8], strides = [1, 1, 1, 1]} : vector<4x1x8x8xf32> to vector<1x1x8x8xf32>
    %234 = vector.shape_cast %233 : vector<1x1x8x8xf32> to vector<1x8x8xf32>
    %235 = vector.shape_cast %234 : vector<1x8x8xf32> to vector<8x8xf32>
    %236 = vector.extract_strided_slice %229 {offsets = [2, 0, 0, 0], sizes = [1, 1, 8, 8], strides = [1, 1, 1, 1]} : vector<4x1x8x8xf32> to vector<1x1x8x8xf32>
    %237 = vector.shape_cast %236 : vector<1x1x8x8xf32> to vector<1x8x8xf32>
    %238 = vector.shape_cast %237 : vector<1x8x8xf32> to vector<8x8xf32>
    %239 = vector.extract_strided_slice %229 {offsets = [3, 0, 0, 0], sizes = [1, 1, 8, 8], strides = [1, 1, 1, 1]} : vector<4x1x8x8xf32> to vector<1x1x8x8xf32>
    %240 = vector.shape_cast %239 : vector<1x1x8x8xf32> to vector<1x8x8xf32>
    %241 = vector.shape_cast %240 : vector<1x8x8xf32> to vector<8x8xf32>
    %242 = tpu.concatenate %232, %235, %238, %241 in 1 : vector<8x8xf32>, vector<8x8xf32>, vector<8x8xf32>, vector<8x8xf32> -> vector<8x32xf32>
    %243 = arith.truncf %242 : vector<8x32xf32> to vector<8x32xbf16>
    %c0_66 = arith.constant 0 : index
    %c0_67 = arith.constant 0 : index
    %c0_68 = arith.constant 0 : index
    %244 = vector.load %arg18[%c0_66, %c0_67, %c0_68] : memref<1x32x32xbf16, #tpu.memory_space<vmem>>, vector<1x32x32xbf16>
    %245 = vector.shape_cast %244 : vector<1x32x32xbf16> to vector<32x32xbf16>
    %cst_69 = arith.constant dense<0.000000e+00> : vector<8x32xf32>
    %246 = tpu.matmul %243, %245, %cst_69 {dimension_numbers = #tpu.dot_dimension_numbers<[1], [0], [0], [1], [0, 0, 1, 1], [], []>} : vector<8x32xbf16>, vector<32x32xbf16>, vector<8x32xf32> -> vector<8x32xf32>
    %247 = arith.addf %123, %246 : vector<8x32xf32>
    %c0_70 = arith.constant 0 : index
    %c0_71 = arith.constant 0 : index
    %c0_72 = arith.constant 0 : index
    %248 = vector.load %arg19[%c0_70, %c0_71, %c0_72] : memref<1x1x32xf32, #tpu.memory_space<vmem>>, vector<1x1x32xf32>
    %249 = vector.shape_cast %248 : vector<1x1x32xf32> to vector<1x32xf32>
    %250 = vector.broadcast %249 : vector<1x32xf32> to vector<8x32xf32>
    %251 = arith.addf %247, %250 : vector<8x32xf32>
    %c0_73 = arith.constant 0 : index
    %c0_74 = arith.constant 0 : index
    %c0_75 = arith.constant 0 : index
    %252 = vector.load %arg20[%c0_73, %c0_74, %c0_75] : memref<1x1x32xf32, #tpu.memory_space<vmem>>, vector<1x1x32xf32>
    %253 = vector.shape_cast %252 : vector<1x1x32xf32> to vector<1x32xf32>
    %c0_76 = arith.constant 0 : index
    %c0_77 = arith.constant 0 : index
    %c0_78 = arith.constant 0 : index
    %254 = vector.load %arg21[%c0_76, %c0_77, %c0_78] : memref<1x1x32xf32, #tpu.memory_space<vmem>>, vector<1x1x32xf32>
    %255 = vector.shape_cast %254 : vector<1x1x32xf32> to vector<1x32xf32>
    %cst_79 = arith.constant dense<0.000000e+00> : vector<8xf32>
    %256 = vector.multi_reduction <add>, %251, %cst_79 [1] : vector<8x32xf32> to vector<8xf32>
    %257 = vector.shape_cast %256 : vector<8xf32> to vector<8x1xf32>
    %cst_80 = arith.constant 3.200000e+01 : f32
    %258 = vector.broadcast %cst_80 : f32 to vector<8x1xf32>
    %259 = arith.divf %257, %258 : vector<8x1xf32>
    %260 = vector.broadcast %259 : vector<8x1xf32> to vector<8x32xf32>
    %261 = arith.subf %251, %260 : vector<8x32xf32>
    %262 = arith.mulf %261, %261 : vector<8x32xf32>
    %cst_81 = arith.constant dense<0.000000e+00> : vector<8xf32>
    %263 = vector.multi_reduction <add>, %262, %cst_81 [1] : vector<8x32xf32> to vector<8xf32>
    %264 = vector.shape_cast %263 : vector<8xf32> to vector<8x1xf32>
    %cst_82 = arith.constant 3.200000e+01 : f32
    %265 = vector.broadcast %cst_82 : f32 to vector<8x1xf32>
    %266 = arith.divf %264, %265 : vector<8x1xf32>
    %cst_83 = arith.constant 9.99999997E-7 : f32
    %267 = vector.broadcast %cst_83 : f32 to vector<8x1xf32>
    %268 = arith.addf %266, %267 : vector<8x1xf32>
    %269 = math.rsqrt %268 : vector<8x1xf32>
    %270 = vector.broadcast %269 : vector<8x1xf32> to vector<8x32xf32>
    %271 = arith.mulf %261, %270 : vector<8x32xf32>
    %272 = vector.broadcast %253 : vector<1x32xf32> to vector<8x32xf32>
    %273 = arith.mulf %271, %272 : vector<8x32xf32>
    %274 = vector.broadcast %255 : vector<1x32xf32> to vector<8x32xf32>
    %275 = arith.addf %273, %274 : vector<8x32xf32>
    %276 = arith.truncf %275 : vector<8x32xf32> to vector<8x32xbf16>
    %c0_84 = arith.constant 0 : index
    %c0_85 = arith.constant 0 : index
    %c0_86 = arith.constant 0 : index
    %277 = vector.load %arg25[%c0_84, %c0_85, %c0_86] : memref<1x1x32xf32, #tpu.memory_space<vmem>>, vector<1x1x32xf32>
    %278 = vector.shape_cast %277 : vector<1x1x32xf32> to vector<1x32xf32>
    %c0_87 = arith.constant 0 : index
    %c0_88 = arith.constant 0 : index
    %c0_89 = arith.constant 0 : index
    %279 = vector.load %arg22[%c0_87, %c0_88, %c0_89] : memref<1x32x128xbf16, #tpu.memory_space<vmem>>, vector<1x32x128xbf16>
    %280 = vector.shape_cast %279 : vector<1x32x128xbf16> to vector<32x128xbf16>
    %cst_90 = arith.constant dense<0.000000e+00> : vector<8x128xf32>
    %281 = tpu.matmul %276, %280, %cst_90 {dimension_numbers = #tpu.dot_dimension_numbers<[1], [0], [0], [1], [0, 0, 1, 1], [], []>} : vector<8x32xbf16>, vector<32x128xbf16>, vector<8x128xf32> -> vector<8x128xf32>
    %c0_91 = arith.constant 0 : index
    %c0_92 = arith.constant 0 : index
    %c0_93 = arith.constant 0 : index
    %282 = vector.load %arg23[%c0_91, %c0_92, %c0_93] : memref<1x1x128xf32, #tpu.memory_space<vmem>>, vector<1x1x128xf32>
    %283 = vector.shape_cast %282 : vector<1x1x128xf32> to vector<1x128xf32>
    %284 = vector.broadcast %283 : vector<1x128xf32> to vector<8x128xf32>
    %285 = arith.addf %281, %284 : vector<8x128xf32>
    %cst_94 = arith.constant 0.000000e+00 : f32
    %286 = vector.broadcast %cst_94 : f32 to vector<8x128xf32>
    %287 = arith.maximumf %285, %286 : vector<8x128xf32>
    %288 = arith.truncf %287 : vector<8x128xf32> to vector<8x128xbf16>
    %c0_95 = arith.constant 0 : index
    %c0_96 = arith.constant 0 : index
    %c0_97 = arith.constant 0 : index
    %289 = vector.load %arg24[%c0_95, %c0_96, %c0_97] : memref<1x128x32xbf16, #tpu.memory_space<vmem>>, vector<1x128x32xbf16>
    %290 = vector.shape_cast %289 : vector<1x128x32xbf16> to vector<128x32xbf16>
    %cst_98 = arith.constant dense<0.000000e+00> : vector<8x32xf32>
    %291 = tpu.matmul %288, %290, %cst_98 {dimension_numbers = #tpu.dot_dimension_numbers<[1], [0], [0], [1], [0, 0, 1, 1], [], []>} : vector<8x128xbf16>, vector<128x32xbf16>, vector<8x32xf32> -> vector<8x32xf32>
    %292 = vector.broadcast %278 : vector<1x32xf32> to vector<8x32xf32>
    %293 = arith.addf %292, %291 : vector<8x32xf32>
    %294 = arith.addf %251, %293 : vector<8x32xf32>
    %c0_99 = arith.constant 0 : index
    %c0_100 = arith.constant 0 : index
    %295 = vector.load %arg29[%c0_99, %c0_100] : memref<8x32xf32, #tpu.memory_space<vmem>>, vector<8x32xf32>
    tpu.vector_store %arg29[%c0_99, %c0_100], %294 {strides = array<i32>} : memref<8x32xf32, #tpu.memory_space<vmem>>, vector<8x32xf32>,
    %c1_i32 = arith.constant 1 : i32
    %296 = arith.cmpi eq, %arg1, %c1_i32 : i32
    %297 = arith.extui %296 : i1 to i32
    %c0_i32_101 = arith.constant 0 : i32
    %298 = arith.cmpi ne, %297, %c0_i32_101 : i32
    scf.if %298 {
      %c0_102 = arith.constant 0 : index
      %c0_103 = arith.constant 0 : index
      %299 = vector.load %arg26[%c0_102, %c0_103] : memref<1x32xf32, #tpu.memory_space<vmem>>, vector<1x32xf32>
      %c0_104 = arith.constant 0 : index
      %c0_105 = arith.constant 0 : index
      %300 = vector.load %arg27[%c0_104, %c0_105] : memref<1x32xf32, #tpu.memory_space<vmem>>, vector<1x32xf32>
      %cst_106 = arith.constant dense<0.000000e+00> : vector<8xf32>
      %301 = vector.multi_reduction <add>, %294, %cst_106 [1] : vector<8x32xf32> to vector<8xf32>
      %302 = vector.shape_cast %301 : vector<8xf32> to vector<8x1xf32>
      %cst_107 = arith.constant 3.200000e+01 : f32
      %303 = vector.broadcast %cst_107 : f32 to vector<8x1xf32>
      %304 = arith.divf %302, %303 : vector<8x1xf32>
      %305 = vector.broadcast %304 : vector<8x1xf32> to vector<8x32xf32>
      %306 = arith.subf %294, %305 : vector<8x32xf32>
      %307 = arith.mulf %306, %306 : vector<8x32xf32>
      %cst_108 = arith.constant dense<0.000000e+00> : vector<8xf32>
      %308 = vector.multi_reduction <add>, %307, %cst_108 [1] : vector<8x32xf32> to vector<8xf32>
      %309 = vector.shape_cast %308 : vector<8xf32> to vector<8x1xf32>
      %cst_109 = arith.constant 3.200000e+01 : f32
      %310 = vector.broadcast %cst_109 : f32 to vector<8x1xf32>
      %311 = arith.divf %309, %310 : vector<8x1xf32>
      %cst_110 = arith.constant 9.99999997E-7 : f32
      %312 = vector.broadcast %cst_110 : f32 to vector<8x1xf32>
      %313 = arith.addf %311, %312 : vector<8x1xf32>
      %314 = math.rsqrt %313 : vector<8x1xf32>
      %315 = vector.broadcast %314 : vector<8x1xf32> to vector<8x32xf32>
      %316 = arith.mulf %306, %315 : vector<8x32xf32>
      %317 = vector.broadcast %299 : vector<1x32xf32> to vector<8x32xf32>
      %318 = arith.mulf %316, %317 : vector<8x32xf32>
      %319 = vector.broadcast %300 : vector<1x32xf32> to vector<8x32xf32>
      %320 = arith.addf %318, %319 : vector<8x32xf32>
      %321 = vector.shape_cast %320 : vector<8x32xf32> to vector<1x8x32xf32>
      %c0_111 = arith.constant 0 : index
      %c0_112 = arith.constant 0 : index
      %c0_113 = arith.constant 0 : index
      %322 = vector.load %arg28[%c0_111, %c0_112, %c0_113] : memref<1x8x32xf32, #tpu.memory_space<vmem>>, vector<1x8x32xf32>
      tpu.vector_store %arg28[%c0_111, %c0_112, %c0_113], %321 {strides = array<i32>} : memref<1x8x32xf32, #tpu.memory_space<vmem>>, vector<1x8x32xf32>,
    } else {
    }
    return
  }
  func.func @transform_0(%arg0: i32, %arg1: i32) -> (i32, i32, i32) {
    %c0_i32 = arith.constant 0 : i32
    %c0_i32_0 = arith.constant 0 : i32
    %c0_i32_1 = arith.constant 0 : i32
    return %arg0, %c0_i32, %c0_i32_0 : i32, i32, i32
  }
  func.func @transform_1(%arg0: i32, %arg1: i32) -> (i32, i32, i32) {
    %c0_i32 = arith.constant 0 : i32
    %c0_i32_0 = arith.constant 0 : i32
    %c0_i32_1 = arith.constant 0 : i32
    return %arg0, %c0_i32, %c0_i32_0 : i32, i32, i32
  }
  func.func @transform_2(%arg0: i32, %arg1: i32) -> (i32, i32) {
    %c0_i32 = arith.constant 0 : i32
    %c0_i32_0 = arith.constant 0 : i32
    %c0_i32_1 = arith.constant 0 : i32
    return %c0_i32, %c0_i32_0 : i32, i32
  }
  func.func @transform_3(%arg0: i32, %arg1: i32) -> (i32, i32) {
    %c0_i32 = arith.constant 0 : i32
    %c0_i32_0 = arith.constant 0 : i32
    %c0_i32_1 = arith.constant 0 : i32
    return %c0_i32, %c0_i32_0 : i32, i32
  }
  func.func @transform_4(%arg0: i32, %arg1: i32) -> (i32, i32, i32) {
    %c0_i32 = arith.constant 0 : i32
    %c0_i32_0 = arith.constant 0 : i32
    %c0_i32_1 = arith.constant 0 : i32
    return %arg1, %c0_i32, %c0_i32_0 : i32, i32, i32
  }
  func.func @transform_5(%arg0: i32, %arg1: i32) -> (i32, i32, i32) {
    %c0_i32 = arith.constant 0 : i32
    %c0_i32_0 = arith.constant 0 : i32
    %c0_i32_1 = arith.constant 0 : i32
    return %arg1, %c0_i32, %c0_i32_0 : i32, i32, i32
  }
  func.func @transform_6(%arg0: i32, %arg1: i32) -> (i32, i32, i32) {
    %c0_i32 = arith.constant 0 : i32
    %c0_i32_0 = arith.constant 0 : i32
    %c0_i32_1 = arith.constant 0 : i32
    return %arg1, %c0_i32, %c0_i32_0 : i32, i32, i32
  }
  func.func @transform_7(%arg0: i32, %arg1: i32) -> (i32, i32, i32) {
    %c0_i32 = arith.constant 0 : i32
    %c0_i32_0 = arith.constant 0 : i32
    %c0_i32_1 = arith.constant 0 : i32
    return %arg1, %c0_i32, %c0_i32_0 : i32, i32, i32
  }
  func.func @transform_8(%arg0: i32, %arg1: i32) -> (i32, i32, i32) {
    %c0_i32 = arith.constant 0 : i32
    %c0_i32_0 = arith.constant 0 : i32
    %c0_i32_1 = arith.constant 0 : i32
    return %arg1, %c0_i32, %c0_i32_0 : i32, i32, i32
  }
  func.func @transform_9(%arg0: i32, %arg1: i32) -> (i32, i32, i32) {
    %c0_i32 = arith.constant 0 : i32
    %c0_i32_0 = arith.constant 0 : i32
    %c0_i32_1 = arith.constant 0 : i32
    return %arg1, %c0_i32, %c0_i32_0 : i32, i32, i32
  }
  func.func @transform_10(%arg0: i32, %arg1: i32) -> (i32, i32, i32) {
    %c0_i32 = arith.constant 0 : i32
    %c0_i32_0 = arith.constant 0 : i32
    %c0_i32_1 = arith.constant 0 : i32
    return %arg1, %c0_i32, %c0_i32_0 : i32, i32, i32
  }
  func.func @transform_11(%arg0: i32, %arg1: i32) -> (i32, i32, i32) {
    %c0_i32 = arith.constant 0 : i32
    %c0_i32_0 = arith.constant 0 : i32
    %c0_i32_1 = arith.constant 0 : i32
    return %arg1, %c0_i32, %c0_i32_0 : i32, i32, i32
  }
  func.func @transform_12(%arg0: i32, %arg1: i32) -> (i32, i32, i32) {
    %c0_i32 = arith.constant 0 : i32
    %c0_i32_0 = arith.constant 0 : i32
    %c0_i32_1 = arith.constant 0 : i32
    return %arg1, %c0_i32, %c0_i32_0 : i32, i32, i32
  }
  func.func @transform_13(%arg0: i32, %arg1: i32) -> (i32, i32, i32) {
    %c0_i32 = arith.constant 0 : i32
    %c0_i32_0 = arith.constant 0 : i32
    %c0_i32_1 = arith.constant 0 : i32
    return %arg1, %c0_i32, %c0_i32_0 : i32, i32, i32
  }
  func.func @transform_14(%arg0: i32, %arg1: i32) -> (i32, i32, i32) {
    %c0_i32 = arith.constant 0 : i32
    %c0_i32_0 = arith.constant 0 : i32
    %c0_i32_1 = arith.constant 0 : i32
    return %arg1, %c0_i32, %c0_i32_0 : i32, i32, i32
  }
  func.func @transform_15(%arg0: i32, %arg1: i32) -> (i32, i32, i32) {
    %c0_i32 = arith.constant 0 : i32
    %c0_i32_0 = arith.constant 0 : i32
    %c0_i32_1 = arith.constant 0 : i32
    return %arg1, %c0_i32, %c0_i32_0 : i32, i32, i32
  }
  func.func @transform_16(%arg0: i32, %arg1: i32) -> (i32, i32, i32) {
    %c0_i32 = arith.constant 0 : i32
    %c0_i32_0 = arith.constant 0 : i32
    %c0_i32_1 = arith.constant 0 : i32
    return %arg1, %c0_i32, %c0_i32_0 : i32, i32, i32
  }
  func.func @transform_17(%arg0: i32, %arg1: i32) -> (i32, i32, i32) {
    %c0_i32 = arith.constant 0 : i32
    %c0_i32_0 = arith.constant 0 : i32
    %c0_i32_1 = arith.constant 0 : i32
    return %arg1, %c0_i32, %c0_i32_0 : i32, i32, i32
  }
  func.func @transform_18(%arg0: i32, %arg1: i32) -> (i32, i32, i32) {
    %c0_i32 = arith.constant 0 : i32
    %c0_i32_0 = arith.constant 0 : i32
    %c0_i32_1 = arith.constant 0 : i32
    return %arg1, %c0_i32, %c0_i32_0 : i32, i32, i32
  }
  func.func @transform_19(%arg0: i32, %arg1: i32) -> (i32, i32, i32) {
    %c0_i32 = arith.constant 0 : i32
    %c0_i32_0 = arith.constant 0 : i32
    %c0_i32_1 = arith.constant 0 : i32
    return %arg1, %c0_i32, %c0_i32_0 : i32, i32, i32
  }
  func.func @transform_20(%arg0: i32, %arg1: i32) -> (i32, i32, i32) {
    %c0_i32 = arith.constant 0 : i32
    %c0_i32_0 = arith.constant 0 : i32
    %c0_i32_1 = arith.constant 0 : i32
    return %arg1, %c0_i32, %c0_i32_0 : i32, i32, i32
  }
  func.func @transform_21(%arg0: i32, %arg1: i32) -> (i32, i32, i32) {
    %c0_i32 = arith.constant 0 : i32
    %c0_i32_0 = arith.constant 0 : i32
    %c0_i32_1 = arith.constant 0 : i32
    return %arg1, %c0_i32, %c0_i32_0 : i32, i32, i32
  }
  func.func @transform_22(%arg0: i32, %arg1: i32) -> (i32, i32, i32) {
    %c0_i32 = arith.constant 0 : i32
    %c0_i32_0 = arith.constant 0 : i32
    %c0_i32_1 = arith.constant 0 : i32
    return %arg1, %c0_i32, %c0_i32_0 : i32, i32, i32
  }
  func.func @transform_23(%arg0: i32, %arg1: i32) -> (i32, i32, i32) {
    %c0_i32 = arith.constant 0 : i32
    %c0_i32_0 = arith.constant 0 : i32
    %c0_i32_1 = arith.constant 0 : i32
    return %arg1, %c0_i32, %c0_i32_0 : i32, i32, i32
  }
  func.func @transform_24(%arg0: i32, %arg1: i32) -> (i32, i32) {
    %c0_i32 = arith.constant 0 : i32
    %c0_i32_0 = arith.constant 0 : i32
    %c0_i32_1 = arith.constant 0 : i32
    return %c0_i32, %c0_i32_0 : i32, i32
  }
  func.func @transform_25(%arg0: i32, %arg1: i32) -> (i32, i32) {
    %c0_i32 = arith.constant 0 : i32
    %c0_i32_0 = arith.constant 0 : i32
    %c0_i32_1 = arith.constant 0 : i32
    return %c0_i32, %c0_i32_0 : i32, i32
  }
  func.func @transform_26(%arg0: i32, %arg1: i32) -> (i32, i32, i32) {
    %c0_i32 = arith.constant 0 : i32
    %c0_i32_0 = arith.constant 0 : i32
    %c0_i32_1 = arith.constant 0 : i32
    return %arg0, %c0_i32, %c0_i32_0 : i32, i32, i32
  }
}

</mosaic_0001>

<bundles_post_ra>
// kernel: tpu_custom_call.1
= control target key start
LH: loop header
LB: loop body
LE: loop exit
PB: predicated region body
PF: predicated region fallthrough
CT: control target
= control target key end

     0   :  { %s5701_s0 = inlined_call_operand.hbm [shape: f32[2,8,32], index: 0, kind: input, shape index: {}]   ;;  %s5702_s1 = inlined_call_operand.hbm [shape: bf16[2,8,32], index: 1, kind: input, shape index: {}]   ;;  %s5703_s2 = inlined_call_operand.hbm [shape: f32[8,8], index: 2, kind: input, shape index: {}]   ;;  %s5704_s3 = inlined_call_operand.hbm [shape: f32[8,8], index: 3, kind: input, shape index: {}]   ;;  %s5705_s4 = inlined_call_operand.hbm [shape: f32[2,1,32], index: 4, kind: input, shape index: {}]   ;;  %s5706_s5 = inlined_call_operand.hbm [shape: f32[2,1,32], index: 5, kind: input, shape index: {}]   ;;  %s5707_s6 = inlined_call_operand.vmem [shape: bf16[2,32,96], index: 6, kind: input, shape index: {}]   ;;  %s5708_s7 = inlined_call_operand.hbm [shape: f32[2,1,96], index: 7, kind: input, shape index: {}]   ;;  %s5709_s8 = inlined_call_operand.vmem [shape: bf16[2,32,32], index: 8, kind: input, shape index: {}]   ;;  %s5710_s9 = inlined_call_operand.hbm [shape: f32[2,1,32], index: 9, kind: input, shape index: {}]   ;;  %s5711_s10 = inlined_call_operand.hbm [shape: f32[2,1,32], index: 10, kind: input, shape index: {}]   ;;  %s5712_s11 = inlined_call_operand.hbm [shape: f32[2,1,32], index: 11, kind: input, shape index: {}]   ;;  %s5713_s12 = inlined_call_operand.vmem [shape: bf16[2,32,32], index: 12, kind: input, shape index: {}]   ;;  %s5714_s13 = inlined_call_operand.hbm [shape: f32[2,1,32], index: 13, kind: input, shape index: {}]   ;;  %s5715_s14 = inlined_call_operand.vmem [shape: bf16[2,32,64], index: 14, kind: input, shape index: {}]   ;;  %s5716_s15 = inlined_call_operand.hbm [shape: f32[2,1,64], index: 15, kind: input, shape index: {}]   ;;  %s5717_s16 = inlined_call_operand.vmem [shape: bf16[2,32,32], index: 16, kind: input, shape index: {}]   ;;  %s5718_s17 = inlined_call_operand.hbm [shape: f32[2,1,32], index: 17, kind: input, shape index: {}]   ;;  %s5719_s18 = inlined_call_operand.vmem [shape: f32[2,1,32], index: 18, kind: input, shape index: {}]   ;;  %s5720_s19 = inlined_call_operand.vmem [shape: f32[2,1,32], index: 19, kind: input, shape index: {}]   ;;  %s5721_s20 = inlined_call_operand.vmem [shape: bf16[2,32,128], index: 20, kind: input, shape index: {}]   ;;  %s5722_s21 = inlined_call_operand.vmem [shape: f32[2,1,128], index: 21, kind: input, shape index: {}]   ;;  %s5723_s22 = inlined_call_operand.vmem [shape: bf16[2,128,32], index: 22, kind: input, shape index: {}]   ;;  %s5724_s23 = inlined_call_operand.vmem [shape: f32[2,1,32], index: 23, kind: input, shape index: {}]   ;;  %s5725_s24 = inlined_call_operand.vmem [shape: f32[1,32], index: 24, kind: input, shape index: {}]   ;;  %s5726_s25 = inlined_call_operand.vmem [shape: f32[1,32], index: 25, kind: input, shape index: {}]   ;;  %s5727_s26 = inlined_call_operand.hbm [shape: f32[2,8,32], index: 26, kind: output, shape index: {}]  }
   0x1   :  { %5782 = sst [smem:[#allocation55_spill]] %s5701_s0 }
   0x2   :  { %5783 = sst [smem:[#allocation56_spill]] %s5702_s1 }
   0x3   :  { %5784 = sst [smem:[#allocation57_spill]] %s5703_s2 }
   0x4   :  { %5785 = sst [smem:[#allocation58_spill]] %s5704_s3 }
   0x5   :  { %5786 = sst [smem:[#allocation59_spill]] %s5705_s4 }
   0x6   :  { %5787 = sst [smem:[#allocation60_spill]] %s5706_s5 }
   0x7   :  { %5788 = sst [smem:[#allocation61_spill]] %s5707_s6 }
   0x8   :  { %5789 = sst [smem:[#allocation62_spill]] %s5708_s7 }
   0x9   :  { %5790 = sst [smem:[#allocation63_spill]] %s5709_s8 }
   0xa   :  { %5791 = sst [smem:[#allocation64_spill]] %s5710_s9 }
   0xb   :  { %5792 = sst [smem:[#allocation65_spill]] %s5711_s10 }
   0xc   :  { %5793 = sst [smem:[#allocation66_spill]] %s5712_s11 }
   0xd   :  { %5794 = sst [smem:[#allocation67_spill]] %s5713_s12 }
   0xe   :  { %5795 = sst [smem:[#allocation68_spill]] %s5714_s13 }
   0xf   :  { %5796 = sst [smem:[#allocation69_spill]] %s5715_s14 }
  0x10   :  { %5797 = sst [smem:[#allocation70_spill]] %s5716_s15 }
  0x11   :  { %5798 = sst [smem:[#allocation71_spill]] %s5717_s16 }
  0x12   :  { %5799 = sst [smem:[#allocation72_spill]] %s5718_s17 }
  0x13   :  { %5800 = sst [smem:[#allocation73_spill]] %s5719_s18 }
  0x14   :  { %5801 = sst [smem:[#allocation74_spill]] %s5720_s19 }
  0x15   :  { %5802 = sst [smem:[#allocation75_spill]] %s5721_s20 }
  0x16   :  { %5803 = sst [smem:[#allocation76_spill]] %s5722_s21 }
  0x17   :  { %5804 = sst [smem:[#allocation77_spill]] %s5723_s22 }
  0x18   :  { %5805 = sst [smem:[#allocation78_spill]] %s5724_s23 }
  0x19   :  { %5806 = sst [smem:[#allocation79_spill]] %s5725_s24 }
  0x1a   :  { %5807 = sst [smem:[#allocation80_spill]] %s5726_s25 }
  0x1b   :  { %5808 = sst [smem:[#allocation81_spill]] %s5727_s26 }
  0x1c   :  { %31 = vsyncpa [#allocation4], 0 }
  0x1d   :  { %33 = vsyncpa [#allocation4 + $0x1], 0 }
  0x1e   :  { %34 = vsyncpa [#allocation7], 0 }
  0x1f   :  { %36 = vsyncpa [#allocation7 + $0x1], 0 }
  0x20   :  { %37 = vsyncpa [#allocation10], 0 }
  0x21   :  { %38 = vsyncpa [#allocation5], 0 }
  0x22   :  { %40 = vsyncpa [#allocation5 + $0x1], 0  ;;  %s4654_s27 = smov 0   ;;  %s4656_s3 = smov 0  }
  0x23   :  { %s4658_s7 = smov 0   ;;  %s4660_s28 = smov 0  }
  0x24   :  { %s4662_s8 = smov 0   ;;  %s4664_s4 = smov 0  }
  0x25   :  { %s4666_s29 = smov 0   ;;  %s4668_s0 = smov 0  }
  0x26   :  { %s4670_s9 = smov 0   ;;  %s4672_s30 = smov 0  }
  0x27   :  { %s4674_s2 = smov 0  }
  0x28 LB: > { %5809 = sst [smem:[#allocation35_spill]] %s4457_s3  ;;  %s4708_s5 = sadd.s32 4294967295, %s4493_s2   ;;  %s4493_s2 = sphi %s4674_s2, %s46_s2   ;;  %s4489_s30 = sphi %s4672_s30, %s5934_s30   ;;  %s4485_s9 = sphi %s4670_s9, %s5933_s9   ;;  %s4481_s0 = sphi %s4668_s0, %s5932_s0   ;;  %s4477_s29 = sphi %s4666_s29, %s5931_s29   ;;  %s4473_s4 = sphi %s4664_s4, %s5930_s4   ;;  %s4469_s8 = sphi %s4662_s8, %s5929_s8   ;;  %s4465_s28 = sphi %s4660_s28, %s5928_s28   ;;  %s4461_s7 = sphi %s4658_s7, %s5927_s7   ;;  %s4457_s3 = sphi %s4656_s3, %s5926_s3   ;;  %s4453_s27 = sphi %s4654_s27, %s5925_s27  }
  0x29   : > { %5810 = sst [smem:[#allocation36_spill]] %s4461_s7  ;;  %p172_p0 = scmp.ne.s32.totalorder %s4457_s3, %s4453_s27 }
  0x2a   : > { %5811 = sst [smem:[#allocation37_spill]] %s4465_s28  ;;  %p5738_p1 = scmp.eq.s32.totalorder %s4708_s5, 0 }
  0x2b   : > { %5812 = sst [smem:[#allocation38_spill]] %s4469_s8  ;;  %p3364_p3 = scmp.ge.s32.totalorder %s4493_s2, 1 }
  0x2c   : > { %5813 = sst [smem:[#allocation39_spill]] %s4473_s4  ;;  %p745_p4 = scmp.lt.s32.totalorder %s4493_s2, 5 }
  0x2d   : > { %5814 = sst [smem:[#allocation40_spill]] %s4477_s29  ;;  %p4717_p5 = por %p172_p0, %p5738_p1 }
  0x2e   : > { %5815 = sst [smem:[#allocation41_spill]] %s4481_s0  ;;  %p4721_p6 = pnand %p3364_p3, %p745_p4 }
  0x2f   : > { %5816 = sst [smem:[#allocation42_spill]] %s4485_s9  ;;  %s4495_s1 = smov [#allocation8]  }
  0x30   : > { %5817 = sst [smem:[#allocation43_spill]] %s4489_s30  ;;  %s758_s26 = sshll.u32 %s4495_s1, 4  ;;  %s759_s26 = int_to_ptr.vmem [resolvable:$true] %s758_s26 }
  0x31   : > { %5818 = sst [smem:[#allocation44_spill]] %s4493_s2  ;;  %p3726_p7 = pneg %p4721_p6 }
  0x32   : > { %s5819_s10 = scalar_select %p4717_p5, 1, 0 }
  0x33   : > { %s5821_s6 = scalar_select %p4721_p6, 1, 0 }
  0x34   : > { %5820 = sst [smem:[#allocation45_spill]] %s5819_s10  ;;  %p4729_p8 = pnand %p3726_p7, %p5738_p1 }
  0x35   : > { %s5823_s24 = sld [smem:[#allocation57_spill]] }
  0x36   : > { %s5822_s27 = scalar_select %p4729_p8, 1, 0 }
  0x37   : > { %p5743_p10 = pneg %p4729_p8 }
  0x3b   : > { %s3937_s22 = scalar_lea.hbm %s5823_s24, 128 }
  0x3c   : > { %p3938_p9 = scmp.ne.s32.totalorder %s5823_s24, %s3937_s22  ;;  %p3944_p13 = scmp.lt.u32.totalorder %s3937_s22, %s5823_s24 }
  0x3e   : > { %p3940_p11 = pnand %p5743_p10, %p3938_p9 }
  0x40   : > { %p3941_p12 = pneg %p3940_p11 }
  0x42   : > { %p3946_p0 = pnand %p3944_p13, %p3941_p12 }
  0x44   : > { %3949 = shalt.err (!%p3946_p0)
}
  0x45   : > { %s3950_s25 = scalar_lea.vmem %s759_s26, 128  ;;  %p3958_p2 = scmp.lt.s32.totalorder %s759_s26, %s759_s26 }
  0x46   : > { %p3951_p3 = scmp.ne.s32.totalorder %s759_s26, %s3950_s25  ;;  %p3959_p1 = scmp.lt.s32.totalorder %s3950_s25, %s3950_s25 }
  0x48   : > { %p3953_p4 = pnand %p3951_p3, %p5743_p10  ;;  %p3960_p5 = por %p3959_p1, %p3958_p2 }
  0x4a   : > { %p3954_p7 = pneg %p3953_p4 }
  0x4c   : > { %p3961_p6 = pnand %p3960_p5, %p3954_p7 }
  0x4e   : > { %3964 = shalt.err (!%p3961_p6)
}
  0x4f   : > { %3729 = dma.hbm_to_vmem [thread:$0]  (!%p4729_p8), %s5823_s24, 128, %s759_s26, [#allocation7]  }
  0x50   : > { %s3363_s20 = sadd.s32 4294967294, %s4493_s2   ;;  %s55_s22 = sadd.s32 1, %s4485_s9 }
  0x51   : > { %p56_p1 = scmp.ge.s32.totalorder %s55_s22, 2  ;;  %s58_s0 = sadd.s32 1, %s4489_s30 }
  0x52   : > { %s65_s1 = sadd.s32 1, %s4473_s4  ;;  %p72_p2 = scmp.ne.s32.totalorder %s4473_s4, %s4469_s8 }
  0x53   : > { %s5936_s22 = smov (%p56_p1, %s55_s22), 0  ;;  %s5938_s0 = smov (!%p56_p1, %s58_s0), %s4489_s30 }
  0x54   : > { %5824 = sst [smem:[#allocation46_spill]] %s5936_s22  ;;  %p73_p5 = scmp.eq.s32.totalorder %s4493_s2, 0 }
  0x55   : > { %p78_p6 = scmp.ne.s32.totalorder %s4469_s8, %s4465_s28  ;;  %p60_p9 = scmp.ge.s32.totalorder %s5938_s0, 2 }
  0x56   : > { %s156_s26 = ssub.s32 %s4485_s9, %s5936_s22  ;;  %p4774_p11 = por %p73_p5, %p72_p2 }
  0x57   : > { %p5826_p12 = scmp.eq.s32.totalorder %s4708_s5, 0  ;;  %s5940_s0 = smov (%p60_p9, %s5938_s0), 0 }
  0x58   : > { %5829 = sst [smem:[#allocation48_spill]] %s5940_s0  ;;  %p157_p0 = scmp.eq.s32.totalorder %s156_s26, 0 }
  0x59   : > { %p4783_p13 = por %p5826_p12, %p78_p6  ;;  %s159_s23 = sadd.s32 1, %s4461_s7 }
  0x5a   : > { %s62_s24 = ssub.s32 %s4489_s30, %s5940_s0  ;;  %p166_p3 = scmp.ne.s32.totalorder %s4461_s7, %s4457_s3 }
  0x5b   : > { %s5827_s21 = scalar_select %p4783_p13, 1, 0 }
  0x5c   : > { %p63_p4 = scmp.eq.s32.totalorder %s62_s24, 0  ;;  %p5830_p7 = scmp.eq.s32.totalorder %s4708_s5, 3 }
  0x5d   : > { %5828 = sst [smem:[#allocation47_spill]] %s5827_s21  ;;  %p4811_p9 = por %p166_p3, %p73_p5 }
  0x5e   : > { %p4799_p1 = por %p5830_p7, %p72_p2  ;;  %p738_p12 = scmp.eq.s32.totalorder %s3363_s20, 3 }
  0x5f   : > { %s4804_s19 = scalar_select %p157_p0, %s4461_s7, %s159_s23  }
  0x60   : > { %s5831_s22 = scalar_select %p4799_p1, 1, 0 }
  0x61   : > { %5833 = sst [smem:[#allocation50_spill]] %s4804_s19  ;;  %p5751_p10 = scmp.lt.s32.totalorder %s4493_s2, 4 }
  0x62   : > { %5832 = sst [smem:[#allocation49_spill]] %s5831_s22  ;;  %p4820_p13 = por %p738_p12, %p78_p6 }
  0x63   : > { %s4807_s16 = scalar_select %p63_p4, %s4473_s4, %s65_s1  }
  0x64   : > { %s5836_s24 = scalar_select %p4820_p13, 1, 0 }
  0x65   : > { %5834 = sst [smem:[#allocation51_spill]] %s4807_s16  ;;  %s788_s14 = sand.u32 1, %s4473_s4  }
  0x66   : > { %5837 = sst [smem:[#allocation52_spill]] %s5836_s24  ;;  %s3369_s22 = sshll.u32 %s4489_s30, 7 }
  0x67   : > { %s3368_s23 = sshll.u32 %s788_s14, 3  ;;  %s5838_s1 = sld [smem:[#allocation55_spill]] }
  0x68   : > { %p4835_p2 = pnand %p5751_p10, %p4774_p11  ;;  %s790_s0 = scalar_lea.vmem [#allocation3], %s3368_s23 }
  0x69   : > { %s797_s4 = sshll.u32 %s790_s0, 4  ;;  %s4839_s24 = sshll.u32 %s788_s14, 2  ;;  %s4841_s4 = int_to_ptr.vmem [resolvable:$true] %s797_s4 }
  0x6a   : > { %s5840_s12 = sand.u32 1, %s4493_s2   ;;  %p3967_p6 = pneg %p4835_p2 }
  0x6b   : > { %s4845_s19 = scalar_lea.sflag [#allocation4], %s5840_s12 }
  0x6d   : > { %s4829_s16 = scalar_lea.hbm %s5838_s1, %s3369_s22  ;;  %s3970_s23 = scalar_lea.hbm %s5838_s1, 256 }
  0x6e   : > { %s3965_s22 = scalar_lea.hbm %s4829_s16, 128  ;;  %p3971_p3 = scmp.lt.u32.totalorder %s4829_s16, %s5838_s1 }
  0x6f   : > { %p3966_p5 = scmp.ne.s32.totalorder %s4829_s16, %s3965_s22  ;;  %p3972_p4 = scmp.lt.u32.totalorder %s3970_s23, %s3965_s22 }
  0x70   : > { %p3974_p12 = scmp.lt.u32.totalorder %s3965_s22, %s4829_s16 }
  0x71   : > { %p3968_p11 = pnand %p3967_p6, %p3966_p5  ;;  %p3973_p7 = por %p3972_p4, %p3971_p3 }
  0x73   : > { %p3969_p0 = pneg %p3968_p11  ;;  %p3975_p10 = por %p3974_p12, %p3973_p7 }
  0x75   : > { %p3976_p13 = pnand %p3975_p10, %p3969_p0 }
  0x77   : > { %3979 = shalt.err (!%p3976_p13)
}
  0x78   : > { %s3980_s12 = scalar_lea.vmem %s4841_s4, 128  ;;  %s4496_s28 = smov [#allocation3]  }
  0x79   : > { %p3981_p5 = scmp.ne.s32.totalorder %s4841_s4, %s3980_s12  ;;  %s3985_s25 = sshll.u32 %s4496_s28, 4  ;;  %s3986_s25 = int_to_ptr.vmem [resolvable:$false] %s3985_s25 }
  0x7a   : > { %s3987_s0 = scalar_lea.vmem %s3986_s25, 256  ;;  %p3988_p8 = scmp.lt.s32.totalorder %s4841_s4, %s3986_s25 }
  0x7b   : > { %p3983_p11 = pnand %p3981_p5, %p3967_p6  ;;  %p3989_p3 = scmp.lt.s32.totalorder %s3987_s0, %s3980_s12 }
  0x7d   : > { %p3984_p1 = pneg %p3983_p11  ;;  %p3990_p4 = por %p3989_p3, %p3988_p8 }
  0x7f   : > { %p3991_p7 = pnand %p3990_p4, %p3984_p1 }
  0x81   : > { %3994 = shalt.err (!%p3991_p7)
}
  0x82   : > { %3736 = dma.hbm_to_vmem [thread:$0]  (!%p4835_p2), %s4829_s16, 128, %s4841_s4, %s4845_s19  }
  0x83   : > { %s4874_s22 = sand.u32 1, %s4461_s7   ;;  %p5841_p10 = scmp.lt.s32.totalorder %s4493_s2, 4 }
  0x84   : > { %s3371_s14 = sshll.u32 %s4489_s30, 6  ;;  %s5843_s25 = sld [smem:[#allocation56_spill]] }
  0x85   : > { %p4880_p8 = pnand %p5841_p10, %p4811_p9  ;;  %s808_s1 = scalar_lea.vmem [#allocation6], %s4839_s24 }
  0x86   : > { %s815_s16 = sshll.u32 %s808_s1, 4  ;;  %s5844_s4 = sand.u32 1, %s4493_s2   ;;  %s816_s16 = int_to_ptr.vmem [resolvable:$true] %s815_s16 }
  0x87   : > { %s5842_s23 = scalar_select %p4880_p8, 1, 0 }
  0x88   : > { %s4893_s26 = scalar_lea.sflag [#allocation7], %s5844_s4 }
  0x8a   : > { %s4888_s0 = scalar_lea.hbm %s5843_s25, %s3371_s14  ;;  %s4000_s14 = scalar_lea.hbm %s5843_s25, 128 }
  0x8b   : > { %s3995_s7 = scalar_lea.hbm %s4888_s0, 64  ;;  %p4001_p0 = scmp.lt.u32.totalorder %s4888_s0, %s5843_s25 }
  0x8c   : > { %p3996_p13 = scmp.ne.s32.totalorder %s4888_s0, %s3995_s7  ;;  %p4002_p12 = scmp.lt.u32.totalorder %s4000_s14, %s3995_s7 }
  0x8d   : > { %p4004_p11 = scmp.lt.u32.totalorder %s3995_s7, %s4888_s0 }
  0x8e   : > { %p3998_p1 = pnand %p3996_p13, %p3967_p6  ;;  %p4003_p5 = por %p4002_p12, %p4001_p0 }
  0x90   : > { %p3999_p9 = pneg %p3998_p1  ;;  %p4005_p3 = por %p4004_p11, %p4003_p5 }
  0x92   : > { %p4006_p4 = pnand %p4005_p3, %p3999_p9 }
  0x94   : > { %4009 = shalt.err (!%p4006_p4)
}
  0x95   : > { %s4010_s24 = scalar_lea.vmem %s816_s16, 64  ;;  %s4497_s1 = smov [#allocation6]  }
  0x96   : > { %p4011_p7 = scmp.ne.s32.totalorder %s816_s16, %s4010_s24  ;;  %s4015_s30 = sshll.u32 %s4497_s1, 4  ;;  %s4016_s30 = int_to_ptr.vmem [resolvable:$false] %s4015_s30 }
  0x97   : > { %s4017_s4 = scalar_lea.vmem %s4016_s30, 128  ;;  %p4018_p1 = scmp.lt.s32.totalorder %s816_s16, %s4016_s30 }
  0x98   : > { %p4013_p10 = pnand %p4011_p7, %p3967_p6  ;;  %p4019_p8 = scmp.lt.s32.totalorder %s4017_s4, %s4010_s24 }
  0x9a   : > { %p4014_p13 = pneg %p4013_p10  ;;  %p4020_p0 = por %p4019_p8, %p4018_p1 }
  0x9c   : > { %p4021_p12 = pnand %p4020_p0, %p4014_p13 }
  0x9e   : > { %4024 = shalt.err (!%p4021_p12)
}
  0x9f   : > { %3739 = dma.hbm_to_vmem [thread:$0]  (!%p4835_p2), %s4888_s0, 64, %s816_s16, %s4893_s26  }
  0xa0   : > { %s4916_s18 = sshll.u32 %s4485_s9, 4  ;;  %s825_s7 = scalar_lea.vmem [#allocation11], %s4874_s22 }
  0xa1   : > { %s832_s12 = sshll.u32 %s825_s7, 4  ;;  %s5845_s1 = sld [smem:[#allocation59_spill]]  ;;  %s833_s12 = int_to_ptr.vmem [resolvable:$true] %s832_s12 }
  0xa2   : > { %p5846_p8 = scmp.ne.s32.totalorder %s5842_s23, 0 }
  0xa4   : > { %p4929_p9 = pneg %p5846_p8 }
  0xa6   : > { %s5847_s0 = scalar_select %p4929_p9, 1, 0 }
  0xa7   : > { %s4923_s24 = scalar_lea.hbm %s5845_s1, %s4916_s18  ;;  %s4030_s4 = scalar_lea.hbm %s5845_s1, 32 }
  0xa8   : > { %s4025_s20 = scalar_lea.hbm %s4923_s24, 16  ;;  %p4031_p11 = scmp.lt.u32.totalorder %s4923_s24, %s5845_s1 }
  0xa9   : > { %p4026_p6 = scmp.ne.s32.totalorder %s4923_s24, %s4025_s20  ;;  %p4032_p3 = scmp.lt.u32.totalorder %s4030_s4, %s4025_s20 }
  0xaa   : > { %p4034_p7 = scmp.lt.u32.totalorder %s4025_s20, %s4923_s24 }
  0xab   : > { %p4028_p2 = pnand %p4929_p9, %p4026_p6  ;;  %p4033_p4 = por %p4032_p3, %p4031_p11 }
  0xad   : > { %p4029_p5 = pneg %p4028_p2  ;;  %p4035_p10 = por %p4034_p7, %p4033_p4 }
  0xaf   : > { %p4036_p13 = pnand %p4035_p10, %p4029_p5 }
  0xb1   : > { %4039 = shalt.err (!%p4036_p13)
}
  0xb2   : > { %s4040_s28 = scalar_lea.vmem %s833_s12, 16  ;;  %s4498_s25 = smov [#allocation11]  }
  0xb3   : > { %p4041_p1 = scmp.ne.s32.totalorder %s833_s12, %s4040_s28  ;;  %s4045_s9 = sshll.u32 %s4498_s25, 4  ;;  %s4046_s9 = int_to_ptr.vmem [resolvable:$false] %s4045_s9 }
  0xb4   : > { %s4047_s16 = scalar_lea.vmem %s4046_s9, 32  ;;  %p4048_p6 = scmp.lt.s32.totalorder %s833_s12, %s4046_s9 }
  0xb5   : > { %p4043_p0 = pnand %p4041_p1, %p4929_p9  ;;  %p4049_p2 = scmp.lt.s32.totalorder %s4047_s16, %s4040_s28 }
  0xb7   : > { %p4044_p12 = pneg %p4043_p0  ;;  %p4050_p8 = por %p4049_p2, %p4048_p6 }
  0xb9   : > { %p4051_p3 = pnand %p4050_p8, %p4044_p12 }
  0xbb   : > { %4054 = shalt.err (!%p4051_p3)
}
  0xbc   : > { %p5848_p11 = scmp.ne.s32.totalorder %s5842_s23, 0  ;;  %s5849_s4 = sld [smem:[#allocation60_spill]] }
  0xbd   : > { %s842_s9 = scalar_lea.vmem [#allocation12], %s4874_s22  ;;  %s5851_s1 = sld [smem:[#allocation62_spill]] }
  0xbe   : > { %3742 = dma.hbm_to_vmem [thread:$0]  (!%p5848_p11), %s4923_s24, 16, %s833_s12, %s4845_s19  }
  0xbf   : > { %s849_s7 = sshll.u32 %s842_s9, 4  ;;  %s850_s7 = int_to_ptr.vmem [resolvable:$true] %s849_s7 }
  0xc2   : > { %s5850_s14 = smov %s5849_s4  ;;  %s4953_s25 = scalar_lea.hbm %s5849_s4, %s4916_s18 }
  0xc3   : > { %s4960_s2 = scalar_lea.hbm %s5851_s1, %s4916_s18  ;;  %s4055_s29 = scalar_lea.hbm %s4953_s25, 16 }
  0xc4   : > { %p4056_p8 = scmp.ne.s32.totalorder %s4953_s25, %s4055_s29  ;;  %s4060_s20 = scalar_lea.hbm %s5850_s14, 32 }
  0xc5   : > { %p4061_p7 = scmp.lt.u32.totalorder %s4953_s25, %s5850_s14  ;;  %p4062_p10 = scmp.lt.u32.totalorder %s4060_s20, %s4055_s29 }
  0xc6   : > { %p4058_p5 = pnand %p4056_p8, %p4929_p9  ;;  %p4064_p1 = scmp.lt.u32.totalorder %s4055_s29, %s4953_s25 }
  0xc7   : > { %p4063_p13 = por %p4062_p10, %p4061_p7 }
  0xc8   : > { %p4059_p4 = pneg %p4058_p5 }
  0xc9   : > { %p4065_p0 = por %p4064_p1, %p4063_p13 }
  0xcb   : > { %p4066_p12 = pnand %p4065_p0, %p4059_p4 }
  0xcd   : > { %4069 = shalt.err (!%p4066_p12)
}
  0xce   : > { %s4070_s9 = scalar_lea.vmem %s850_s7, 16  ;;  %s4499_s28 = smov [#allocation12]  }
  0xcf   : > { %p4071_p6 = scmp.ne.s32.totalorder %s850_s7, %s4070_s9  ;;  %s4075_s16 = sshll.u32 %s4499_s28, 4  ;;  %s4076_s16 = int_to_ptr.vmem [resolvable:$false] %s4075_s16 }
  0xd0   : > { %s4077_s12 = scalar_lea.vmem %s4076_s16, 32  ;;  %p4078_p8 = scmp.lt.s32.totalorder %s850_s7, %s4076_s16 }
  0xd1   : > { %p4073_p2 = pnand %p4071_p6, %p4929_p9  ;;  %p4079_p5 = scmp.lt.s32.totalorder %s4077_s12, %s4070_s9 }
  0xd3   : > { %p4074_p3 = pneg %p4073_p2  ;;  %p4080_p11 = por %p4079_p5, %p4078_p8 }
  0xd5   : > { %p4081_p7 = pnand %p4080_p11, %p4074_p3 }
  0xd7   : > { %4084 = shalt.err (!%p4081_p7)
}
  0xd8   : > { %p5852_p10 = scmp.ne.s32.totalorder %s5842_s23, 0  ;;  %s867_s29 = scalar_lea.vmem [#allocation13], %s4874_s22 }
  0xd9   : > { %s874_s24 = sshll.u32 %s867_s29, 4  ;;  %s5853_s4 = sld [smem:[#allocation64_spill]]  ;;  %s875_s24 = int_to_ptr.vmem [resolvable:$true] %s874_s24 }
  0xda   : > { %3745 = dma.hbm_to_vmem [thread:$0]  (!%p5852_p10), %s4953_s25, 16, %s850_s7, %s4893_s26  }
  0xdb   : > { %s4085_s28 = scalar_lea.hbm %s4960_s2, 16  ;;  %s4090_s10 = scalar_lea.hbm %s5851_s1, 32 }
  0xdc   : > { %p4086_p11 = scmp.ne.s32.totalorder %s4960_s2, %s4085_s28  ;;  %p4091_p1 = scmp.lt.u32.totalorder %s4960_s2, %s5851_s1 }
  0xdd   : > { %p4092_p0 = scmp.lt.u32.totalorder %s4090_s10, %s4085_s28  ;;  %p4094_p6 = scmp.lt.u32.totalorder %s4085_s28, %s4960_s2 }
  0xde   : > { %p4088_p4 = pnand %p4086_p11, %p4929_p9 }
  0xdf   : > { %s5854_s16 = smov %s5853_s4  ;;  %s4985_s9 = scalar_lea.hbm %s5853_s4, %s4916_s18 }
  0xe0   : > { %p4089_p13 = pneg %p4088_p4  ;;  %p4093_p12 = por %p4092_p0, %p4091_p1 }
  0xe2   : > { %p4095_p2 = por %p4094_p6, %p4093_p12 }
  0xe4   : > { %p4096_p3 = pnand %p4095_p2, %p4089_p13 }
  0xe6   : > { %4099 = shalt.err (!%p4096_p3)
}
  0xe7   : > { %s4100_s25 = scalar_lea.vmem %s875_s24, 16  ;;  %s4500_s7 = smov [#allocation13]  }
  0xe8   : > { %p4101_p8 = scmp.ne.s32.totalorder %s875_s24, %s4100_s25  ;;  %s4105_s29 = sshll.u32 %s4500_s7, 4  ;;  %s4106_s29 = int_to_ptr.vmem [resolvable:$false] %s4105_s29 }
  0xe9   : > { %s4107_s14 = scalar_lea.vmem %s4106_s29, 32  ;;  %p4108_p11 = scmp.lt.s32.totalorder %s875_s24, %s4106_s29 }
  0xea   : > { %p4103_p5 = pnand %p4101_p8, %p4929_p9  ;;  %p4109_p4 = scmp.lt.s32.totalorder %s4107_s14, %s4100_s25 }
  0xec   : > { %p4104_p7 = pneg %p4103_p5  ;;  %p4110_p10 = por %p4109_p4, %p4108_p11 }
  0xee   : > { %p4111_p0 = pnand %p4110_p10, %p4104_p7 }
  0xf0   : > { %4114 = shalt.err (!%p4111_p0)
}
  0xf1   : > { %p5855_p1 = scmp.ne.s32.totalorder %s5842_s23, 0  ;;  %s892_s3 = scalar_lea.vmem [#allocation14], %s4874_s22 }
  0xf2   : > { %s899_s10 = sshll.u32 %s892_s3, 4  ;;  %s5856_s30 = sld [smem:[#allocation65_spill]]  ;;  %s900_s10 = int_to_ptr.vmem [resolvable:$true] %s899_s10 }
  0xf3   : > { %3748 = dma.hbm_to_vmem [thread:$0]  (!%p5855_p1), %s4960_s2, 16, %s875_s24, %s4845_s19  }
  0xf4   : > { %s4115_s28 = scalar_lea.hbm %s4985_s9, 16  ;;  %s4120_s29 = scalar_lea.hbm %s5854_s16, 32 }
  0xf5   : > { %p4116_p10 = scmp.ne.s32.totalorder %s4985_s9, %s4115_s28  ;;  %p4121_p6 = scmp.lt.u32.totalorder %s4985_s9, %s5854_s16 }
  0xf6   : > { %p4122_p2 = scmp.lt.u32.totalorder %s4120_s29, %s4115_s28  ;;  %p4124_p8 = scmp.lt.u32.totalorder %s4115_s28, %s4985_s9 }
  0xf7   : > { %p4118_p13 = pnand %p4116_p10, %p4929_p9 }
  0xf8   : > { %s5857_s12 = smov %s5856_s30  ;;  %s5010_s4 = scalar_lea.hbm %s5856_s30, %s4916_s18 }
  0xf9   : > { %p4119_p12 = pneg %p4118_p13  ;;  %p4123_p3 = por %p4122_p2, %p4121_p6 }
  0xfb   : > { %p4125_p5 = por %p4124_p8, %p4123_p3 }
  0xfd   : > { %p4126_p7 = pnand %p4125_p5, %p4119_p12 }
  0xff   : > { %4129 = shalt.err (!%p4126_p7)
}
 0x100   : > { %s4130_s2 = scalar_lea.vmem %s900_s10, 16  ;;  %s4501_s24 = smov [#allocation14]  }
 0x101   : > { %p4131_p11 = scmp.ne.s32.totalorder %s900_s10, %s4130_s2  ;;  %s4135_s3 = sshll.u32 %s4501_s24, 4  ;;  %s4136_s3 = int_to_ptr.vmem [resolvable:$false] %s4135_s3 }
 0x102   : > { %s4137_s21 = scalar_lea.vmem %s4136_s3, 32  ;;  %p4138_p10 = scmp.lt.s32.totalorder %s900_s10, %s4136_s3 }
 0x103   : > { %p4133_p4 = pnand %p4131_p11, %p4929_p9  ;;  %p4139_p13 = scmp.lt.s32.totalorder %s4137_s21, %s4130_s2 }
 0x105   : > { %p4134_p0 = pneg %p4133_p4  ;;  %p4140_p1 = por %p4139_p13, %p4138_p10 }
 0x107   : > { %p4141_p2 = pnand %p4140_p1, %p4134_p0 }
 0x109   : > { %4144 = shalt.err (!%p4141_p2)
}
 0x10a   : > { %p5858_p6 = scmp.ne.s32.totalorder %s5842_s23, 0  ;;  %s909_s1 = scalar_lea.vmem [#allocation15], %s4874_s22 }
 0x10b   : > { %s916_s20 = sshll.u32 %s909_s1, 4  ;;  %s5859_s11 = sld [smem:[#allocation66_spill]]  ;;  %s917_s20 = int_to_ptr.vmem [resolvable:$true] %s916_s20 }
 0x10c   : > { %3751 = dma.hbm_to_vmem [thread:$0]  (!%p5858_p6), %s4985_s9, 16, %s900_s10, %s4893_s26  }
 0x10d   : > { %s4145_s7 = scalar_lea.hbm %s5010_s4, 16  ;;  %s4150_s2 = scalar_lea.hbm %s5857_s12, 32 }
 0x10e   : > { %p4146_p1 = scmp.ne.s32.totalorder %s5010_s4, %s4145_s7  ;;  %p4151_p8 = scmp.lt.u32.totalorder %s5010_s4, %s5857_s12 }
 0x10f   : > { %p4152_p5 = scmp.lt.u32.totalorder %s4150_s2, %s4145_s7  ;;  %p4154_p11 = scmp.lt.u32.totalorder %s4145_s7, %s5010_s4 }
 0x110   : > { %p4148_p12 = pnand %p4146_p1, %p4929_p9 }
 0x111   : > { %s5035_s25 = scalar_lea.hbm %s5859_s11, %s4916_s18  ;;  %p4153_p7 = por %p4152_p5, %p4151_p8 }
 0x112   : > { %p4149_p3 = pneg %p4148_p12 }
 0x113   : > { %p4155_p4 = por %p4154_p11, %p4153_p7 }
 0x115   : > { %p4156_p0 = pnand %p4155_p4, %p4149_p3 }
 0x117   : > { %4159 = shalt.err (!%p4156_p0)
}
 0x118   : > { %s4160_s9 = scalar_lea.vmem %s917_s20, 16  ;;  %s4502_s10 = smov [#allocation15]  }
 0x119   : > { %p4161_p10 = scmp.ne.s32.totalorder %s917_s20, %s4160_s9  ;;  %s4165_s21 = sshll.u32 %s4502_s10, 4  ;;  %s4166_s21 = int_to_ptr.vmem [resolvable:$false] %s4165_s21 }
 0x11a   : > { %s4167_s1 = scalar_lea.vmem %s4166_s21, 32  ;;  %p4168_p1 = scmp.lt.s32.totalorder %s917_s20, %s4166_s21 }
 0x11b   : > { %p4163_p13 = pnand %p4161_p10, %p4929_p9  ;;  %p4169_p12 = scmp.lt.s32.totalorder %s4167_s1, %s4160_s9 }
 0x11d   : > { %p4164_p2 = pneg %p4163_p13  ;;  %p4170_p6 = por %p4169_p12, %p4168_p1 }
 0x11f   : > { %p4171_p5 = pnand %p4170_p6, %p4164_p2 }
 0x121   : > { %4174 = shalt.err (!%p4171_p5)
}
 0x122   : > { %p5860_p8 = scmp.ne.s32.totalorder %s5842_s23, 0  ;;  %s926_s30 = scalar_lea.vmem [#allocation16], %s4874_s22 }
 0x123   : > { %s933_s28 = sshll.u32 %s926_s30, 4  ;;  %s5861_s13 = sld [smem:[#allocation68_spill]]  ;;  %s934_s28 = int_to_ptr.vmem [resolvable:$true] %s933_s28 }
 0x124   : > { %3754 = dma.hbm_to_vmem [thread:$0]  (!%p5860_p8), %s5010_s4, 16, %s917_s20, %s4845_s19  }
 0x125   : > { %s4175_s2 = scalar_lea.hbm %s5035_s25, 16  ;;  %s4180_s9 = scalar_lea.hbm %s5859_s11, 32 }
 0x126   : > { %p4176_p6 = scmp.ne.s32.totalorder %s5035_s25, %s4175_s2  ;;  %p4181_p11 = scmp.lt.u32.totalorder %s5035_s25, %s5859_s11 }
 0x127   : > { %p4182_p4 = scmp.lt.u32.totalorder %s4180_s9, %s4175_s2  ;;  %p4184_p10 = scmp.lt.u32.totalorder %s4175_s2, %s5035_s25 }
 0x128   : > { %p4178_p3 = pnand %p4176_p6, %p4929_p9 }
 0x129   : > { %s5060_s14 = scalar_lea.hbm %s5861_s13, %s4916_s18  ;;  %p4183_p0 = por %p4182_p4, %p4181_p11 }
 0x12a   : > { %p4179_p7 = pneg %p4178_p3 }
 0x12b   : > { %p4185_p13 = por %p4184_p10, %p4183_p0 }
 0x12d   : > { %p4186_p2 = pnand %p4185_p13, %p4179_p7 }
 0x12f   : > { %4189 = shalt.err (!%p4186_p2)
}
 0x130   : > { %s4190_s4 = scalar_lea.vmem %s934_s28, 16  ;;  %s4503_s20 = smov [#allocation16]  }
 0x131   : > { %p4191_p1 = scmp.ne.s32.totalorder %s934_s28, %s4190_s4  ;;  %s4195_s1 = sshll.u32 %s4503_s20, 4  ;;  %s4196_s1 = int_to_ptr.vmem [resolvable:$false] %s4195_s1 }
 0x132   : > { %s4197_s30 = scalar_lea.vmem %s4196_s1, 32  ;;  %p4198_p6 = scmp.lt.s32.totalorder %s934_s28, %s4196_s1 }
 0x133   : > { %p4193_p12 = pnand %p4191_p1, %p4929_p9  ;;  %p4199_p3 = scmp.lt.s32.totalorder %s4197_s30, %s4190_s4 }
 0x135   : > { %p4194_p5 = pneg %p4193_p12  ;;  %p4200_p8 = por %p4199_p3, %p4198_p6 }
 0x137   : > { %p4201_p4 = pnand %p4200_p8, %p4194_p5 }
 0x139   : > { %4204 = shalt.err (!%p4201_p4)
}
 0x13a   : > { %p5862_p11 = scmp.ne.s32.totalorder %s5842_s23, 0  ;;  %s951_s7 = scalar_lea.vmem [#allocation17], %s4874_s22 }
 0x13b   : > { %s958_s29 = sshll.u32 %s951_s7, 4  ;;  %s4504_s2 = smov [#allocation9]   ;;  %s5081_s29 = int_to_ptr.vmem [resolvable:$true] %s958_s29 }
 0x13c   : > { %3757 = dma.hbm_to_vmem [thread:$0]  (!%p5862_p11), %s5035_s25, 16, %s934_s28, %s4893_s26  }
 0x13d   : > { %s769_s24 = sshll.u32 %s4504_s2, 4  ;;  %s4205_s3 = scalar_lea.hbm %s5060_s14, 16  ;;  %s770_s24 = int_to_ptr.vmem [resolvable:$true] %s769_s24 }
 0x13e   : > { %p4206_p8 = scmp.ne.s32.totalorder %s5060_s14, %s4205_s3  ;;  %s4210_s21 = scalar_lea.hbm %s5861_s13, 32 }
 0x13f   : > { %p4211_p10 = scmp.lt.u32.totalorder %s5060_s14, %s5861_s13  ;;  %p4212_p13 = scmp.lt.u32.totalorder %s4210_s21, %s4205_s3 }
 0x140   : > { %p4208_p7 = pnand %p4206_p8, %p4929_p9  ;;  %p4214_p1 = scmp.lt.u32.totalorder %s4205_s3, %s5060_s14 }
 0x141   : > { %p4213_p2 = por %p4212_p13, %p4211_p10 }
 0x142   : > { %p4209_p0 = pneg %p4208_p7 }
 0x143   : > { %p4215_p12 = por %p4214_p1, %p4213_p2 }
 0x145   : > { %p4216_p5 = pnand %p4215_p12, %p4209_p0 }
 0x147   : > { %4219 = shalt.err (!%p4216_p5)
}
 0x148   : > { %s4220_s25 = scalar_lea.vmem %s5081_s29, 16  ;;  %s4505_s28 = smov [#allocation17]  }
 0x149   : > { %p4221_p6 = scmp.ne.s32.totalorder %s5081_s29, %s4220_s25  ;;  %s4225_s1 = sshll.u32 %s4505_s28, 4  ;;  %s4226_s1 = int_to_ptr.vmem [resolvable:$false] %s4225_s1 }
 0x14a   : > { %s4227_s30 = scalar_lea.vmem %s4226_s1, 32  ;;  %p4228_p8 = scmp.lt.s32.totalorder %s5081_s29, %s4226_s1 }
 0x14b   : > { %p4223_p3 = pnand %p4221_p6, %p4929_p9  ;;  %p4229_p7 = scmp.lt.s32.totalorder %s4227_s30, %s4220_s25 }
 0x14d   : > { %p4224_p4 = pneg %p4223_p3  ;;  %p4230_p10 = por %p4229_p7, %p4228_p8 }
 0x14f   : > { %p4231_p13 = pnand %p4230_p10, %p4224_p4 }
 0x151   : > { %4234 = shalt.err (!%p4231_p13)
}
 0x152   : > { %3760 = dma.hbm_to_vmem [thread:$0]  (!%p5862_p11), %s5060_s14, 16, %s5081_s29, %s4845_s19  }
 0x153   : > { %s5863_s3 = sld [smem:[#allocation58_spill]]  ;;  %p5865_p2 = scmp.ne.s32.totalorder %s5822_s27, 0 }
 0x155   : > { %p5866_p1 = pneg %p5865_p2 }
 0x159   : > { %s5864_s10 = smov %s5863_s3  ;;  %s4235_s9 = scalar_lea.hbm %s5863_s3, 128 }
 0x15a   : > { %p4236_p0 = scmp.ne.s32.totalorder %s5864_s10, %s4235_s9  ;;  %p4242_p6 = scmp.lt.u32.totalorder %s4235_s9, %s5864_s10 }
 0x15c   : > { %p4238_p12 = pnand %p4236_p0, %p5866_p1 }
 0x15e   : > { %p4239_p5 = pneg %p4238_p12 }
 0x160   : > { %p4244_p3 = pnand %p4242_p6, %p4239_p5 }
 0x162   : > { %4247 = shalt.err (!%p4244_p3)
}
 0x163   : > { %s4248_s14 = scalar_lea.vmem %s770_s24, 128  ;;  %p5867_p8 = pmov %p5866_p1 }
 0x164   : > { %p4249_p4 = scmp.ne.s32.totalorder %s770_s24, %s4248_s14  ;;  %p4256_p13 = scmp.lt.s32.totalorder %s770_s24, %s770_s24 }
 0x165   : > { %p4257_p11 = scmp.lt.s32.totalorder %s4248_s14, %s4248_s14 }
 0x166   : > { %p4251_p7 = pnand %p4249_p4, %p5867_p8 }
 0x167   : > { %p4258_p9 = por %p4257_p11, %p4256_p13 }
 0x168   : > { %p4252_p10 = pneg %p4251_p7 }
 0x16a   : > { %p4259_p0 = pnand %p4258_p9, %p4252_p10 }
 0x16c   : > { %4262 = shalt.err (!%p4259_p0)
}
 0x16d   : > { %3732 = dma.hbm_to_vmem [thread:$0]  (!%p5865_p2), %s5864_s10, 128, %s770_s24, [#allocation10]  }
 0x16e   : > { %s5868_s15 = sld [smem:[#allocation70_spill]]  ;;  %s976_s2 = scalar_lea.vmem [#allocation18], %s4874_s22 }
 0x16f   : > { %s983_s3 = sshll.u32 %s976_s2, 4  ;;  %p5869_p11 = scmp.ne.s32.totalorder %s5847_s0, 0  ;;  %s984_s3 = int_to_ptr.vmem [resolvable:$true] %s983_s3 }
 0x174   : > { %s5129_s7 = scalar_lea.hbm %s5868_s15, %s4916_s18  ;;  %s4268_s24 = scalar_lea.hbm %s5868_s15, 32 }
 0x175   : > { %s4263_s27 = scalar_lea.hbm %s5129_s7, 16  ;;  %p4269_p2 = scmp.lt.u32.totalorder %s5129_s7, %s5868_s15 }
 0x176   : > { %p4264_p9 = scmp.ne.s32.totalorder %s5129_s7, %s4263_s27  ;;  %p4270_p5 = scmp.lt.u32.totalorder %s4268_s24, %s4263_s27 }
 0x177   : > { %p4272_p3 = scmp.lt.u32.totalorder %s4263_s27, %s5129_s7 }
 0x178   : > { %p4266_p1 = pnand %p4264_p9, %p5869_p11  ;;  %p4271_p6 = por %p4270_p5, %p4269_p2 }
 0x17a   : > { %p4267_p12 = pneg %p4266_p1  ;;  %p4273_p4 = por %p4272_p3, %p4271_p6 }
 0x17c   : > { %p4274_p8 = pnand %p4273_p4, %p4267_p12 }
 0x17e   : > { %4277 = shalt.err (!%p4274_p8)
}
 0x17f   : > { %s4278_s25 = scalar_lea.vmem %s984_s3, 16  ;;  %s4506_s14 = smov [#allocation18]  }
 0x180   : > { %p4279_p7 = scmp.ne.s32.totalorder %s984_s3, %s4278_s25  ;;  %s4283_s29 = sshll.u32 %s4506_s14, 4  ;;  %s4284_s29 = int_to_ptr.vmem [resolvable:$false] %s4283_s29 }
 0x181   : > { %s4285_s28 = scalar_lea.vmem %s4284_s29, 32  ;;  %p4286_p0 = scmp.lt.s32.totalorder %s984_s3, %s4284_s29 }
 0x182   : > { %p4281_p10 = pnand %p4279_p7, %p5869_p11  ;;  %p4287_p9 = scmp.lt.s32.totalorder %s4285_s28, %s4278_s25 }
 0x184   : > { %p4282_p13 = pneg %p4281_p10  ;;  %p4288_p1 = por %p4287_p9, %p4286_p0 }
 0x186   : > { %p4289_p2 = pnand %p4288_p1, %p4282_p13 }
 0x188   : > { %4292 = shalt.err (!%p4289_p2)
}
 0x189   : > { %p5870_p5 = scmp.ne.s32.totalorder %s5842_s23, 0  ;;  %s5871_s17 = sld [smem:[#allocation72_spill]] }
 0x18a   : > { %s1001_s27 = scalar_lea.vmem [#allocation19], %s4874_s22 }
 0x18b   : > { %3763 = dma.hbm_to_vmem [thread:$0]  (!%p5870_p5), %s5129_s7, 16, %s984_s3, %s4893_s26  }
 0x18c   : > { %s1008_s9 = sshll.u32 %s1001_s27, 4  ;;  %s1009_s9 = int_to_ptr.vmem [resolvable:$true] %s1008_s9 }
 0x18f   : > { %s5154_s2 = scalar_lea.hbm %s5871_s17, %s4916_s18  ;;  %s4298_s26 = scalar_lea.hbm %s5871_s17, 32 }
 0x190   : > { %s4293_s21 = scalar_lea.hbm %s5154_s2, 16  ;;  %p4299_p4 = scmp.lt.u32.totalorder %s5154_s2, %s5871_s17 }
 0x191   : > { %p4294_p12 = scmp.ne.s32.totalorder %s5154_s2, %s4293_s21  ;;  %p4300_p8 = scmp.lt.u32.totalorder %s4298_s26, %s4293_s21 }
 0x192   : > { %p4302_p10 = scmp.lt.u32.totalorder %s4293_s21, %s5154_s2 }
 0x193   : > { %p4296_p6 = pnand %p4294_p12, %p5869_p11  ;;  %p4301_p7 = por %p4300_p8, %p4299_p4 }
 0x195   : > { %p4297_p3 = pneg %p4296_p6  ;;  %p4303_p13 = por %p4302_p10, %p4301_p7 }
 0x197   : > { %p4304_p0 = pnand %p4303_p13, %p4297_p3 }
 0x199   : > { %4307 = shalt.err (!%p4304_p0)
}
 0x19a   : > { %s4308_s22 = scalar_lea.vmem %s1009_s9, 16  ;;  %s4507_s18 = smov [#allocation19]  }
 0x19b   : > { %p4309_p9 = scmp.ne.s32.totalorder %s1009_s9, %s4308_s22  ;;  %s4313_s20 = sshll.u32 %s4507_s18, 4  ;;  %s4314_s20 = int_to_ptr.vmem [resolvable:$false] %s4313_s20 }
 0x19c   : > { %s4315_s25 = scalar_lea.vmem %s4314_s20, 32  ;;  %p4316_p12 = scmp.lt.s32.totalorder %s1009_s9, %s4314_s20 }
 0x19d   : > { %p4311_p1 = pnand %p4309_p9, %p5869_p11  ;;  %p4317_p6 = scmp.lt.s32.totalorder %s4315_s25, %s4308_s22 }
 0x19f   : > { %p4312_p2 = pneg %p4311_p1  ;;  %p4318_p5 = por %p4317_p6, %p4316_p12 }
 0x1a1   : > { %p4319_p4 = pnand %p4318_p5, %p4312_p2 }
 0x1a3   : > { %4322 = shalt.err (!%p4319_p4)
}
 0x1a4   : > { %p5872_p8 = scmp.ne.s32.totalorder %s5842_s23, 0  ;;  %p5873_p3 = scmp.ne.s32.totalorder %s5821_s6, 0 }
 0x1a6   : > { %3766 = dma.hbm_to_vmem [thread:$0]  (!%p5872_p8), %s5154_s2, 16, %s1009_s9, %s4845_s19  }
 0x1a7   : > { %1057 = sbr.rel (%p5873_p3) target bundleno = 5173 (0x1435), region = 124 }
 0x1ae   : > { %s5874_s0 = sld [smem:[#allocation47_spill]]  ;;  %s1059_s14 = sand.u32 1, %s4708_s5  }
 0x1af   : > { %s5179_s29 = sand.u32 1, %s4469_s8   ;;  %s5182_s1 = scalar_lea.sflag [#allocation4], %s1059_s14 }
 0x1b0   : > { %s5775_s28 = sshll.u32 %s5179_s29, 3 }
 0x1b1   : > { %s5186_s23 = scalar_lea.vmem [#allocation3], %s5775_s28 }
 0x1b4   : > { %p5875_p11 = scmp.ne.s32.totalorder %s5874_s0, 0 }
 0x1b6   : > { %4396 = dma.done.wait (%p5875_p11), %s5182_s1, 128  }
 0x1b7   : > { %4398 = vsyncadd (%p5875_p11), %s5182_s1, 4294967168  ;;  %s3383_s6 = sshll.u32 %s5179_s29, 2  ;;  %s5195_s19 = scalar_lea.sflag [#allocation7], %s1059_s14 }
 0x1b8   : > { %s5197_s30 = scalar_lea.vmem [#allocation6], %s3383_s6 }
 0x1b9   : > { %4400 = dma.done.wait (%p5875_p11), %s5195_s19, 64  }
 0x1ba   : > { %4402 = vsyncadd (%p5875_p11), %s5195_s19, 4294967232  ;;  %p5876_p5 = scmp.eq.s32.totalorder %s4708_s5, 0 }
 0x1bc   : > { %4404 = dma.done.wait (%p5876_p5), [#allocation7], 128   ;;  %p5877_p7 = pmov %p5876_p5 }
 0x1bd   : > { %p5878_p10 = pmov %p5876_p5 }
 0x1be   : > { %4406 = vsyncadd (%p5877_p7), [#allocation7], 4294967168 }
 0x1bf   : > { %4408 = dma.done.wait (%p5878_p10), [#allocation10], 128   ;;  %p5879_p13 = pmov %p5876_p5 }
 0x1c0   : > { %s5880_s2 = sld [smem:[#allocation35_spill]]  ;;  %s5881_s27 = sld [smem:[#allocation45_spill]] }
 0x1c1   : > { %4410 = vsyncadd (%p5879_p13), [#allocation10], 4294967168 }
 0x1c6   : > { %s5214_s9 = sand.u32 1, %s5880_s2   ;;  %p5882_p0 = scmp.ne.s32.totalorder %s5881_s27, 0 }
 0x1c8   : > { %4412 = dma.done.wait (%p5882_p0), %s5182_s1, 16  }
 0x1c9   : > { %4414 = vsyncadd (%p5882_p0), %s5182_s1, 4294967280 }
 0x1ca   : > { %4416 = dma.done.wait (%p5882_p0), %s5195_s19, 16  }
 0x1cb   : > { %4418 = vsyncadd (%p5882_p0), %s5195_s19, 4294967280 }
 0x1cc   : > { %4420 = dma.done.wait (%p5882_p0), %s5182_s1, 16  }
 0x1cd   : > { %4422 = vsyncadd (%p5882_p0), %s5182_s1, 4294967280 }
 0x1ce   : > { %4424 = dma.done.wait (%p5882_p0), %s5195_s19, 16  }
 0x1cf   : > { %4426 = vsyncadd (%p5882_p0), %s5195_s19, 4294967280 }
 0x1d0   : > { %4428 = dma.done.wait (%p5882_p0), %s5182_s1, 16  }
 0x1d1   : > { %4430 = vsyncadd (%p5882_p0), %s5182_s1, 4294967280 }
 0x1d2   : > { %4432 = dma.done.wait (%p5882_p0), %s5195_s19, 16  }
 0x1d3   : > { %4434 = vsyncadd (%p5882_p0), %s5195_s19, 4294967280 }
 0x1d4   : > { %4436 = dma.done.wait (%p5882_p0), %s5182_s1, 16  }
 0x1d5   : > { %4438 = vsyncadd (%p5882_p0), %s5182_s1, 4294967280 }
 0x1d6   : > { %4440 = dma.done.wait (%p5882_p0), %s5195_s19, 16  }
 0x1d7   : > { %4442 = vsyncadd (%p5882_p0), %s5195_s19, 4294967280 }
 0x1d8   : > { %4444 = dma.done.wait (%p5882_p0), %s5182_s1, 16  }
 0x1d9   : > { %4446 = vsyncadd (%p5882_p0), %s5182_s1, 4294967280  ;;  %s5883_s20 = sld [smem:[#allocation40_spill]]  ;;  %s5886_s26 = sld [smem:[#allocation63_spill]] }
 0x1da   : > { %s5885_s1 = sld [smem:[#allocation61_spill]]  ;;  %s5887_s21 = sld [smem:[#allocation67_spill]] }
 0x1db   : > { %s5889_s12 = sld [smem:[#allocation69_spill]]  ;;  %s5890_s18 = sld [smem:[#allocation71_spill]] }
 0x1dc   : > { %s5892_s7 = sld [smem:[#allocation74_spill]]  ;;  %s5893_s15 = sld [smem:[#allocation75_spill]] }
 0x1dd   : > { %s5894_s16 = sld [smem:[#allocation76_spill]]  ;;  %s5895_s8 = sld [smem:[#allocation78_spill]] }
 0x1de   : > { %s5897_s2 = sshll.u32 %s5179_s29, 3 }
 0x1df   : > { %p1309_p9 = scmp.lt.s32.totalorder %s5883_s20, 1  ;;  %p3401_p1 = scmp.ne.s32.totalorder %s5883_s20, 0 }
 0x1e0   : > { %v1361_v0 = vld [vmem:[%s5186_s23] sm:$0xff] (!%p3401_p1)  ;;  %vm1362_vm0 = vcmask (!%p3401_p1), 261120  }
 0x1e1   : > { %s5281_s25 = scalar_select %p1309_p9, %s5883_s20, 1 }
 0x1e2   : > { %1363 = vst.msk [vmem:[#allocation2] sm:$0xff] (!%p3401_p1), %vm1362_vm0, %v1361_v0 }
 0x1e3   : > { %s3464_s0 = sshll.u32 %s5281_s25, 4  ;;  %s1347_s11 = scalar_lea.vmem %s5894_s16, %s5281_s25 }
 0x1e4   : > { %s5291_s3 = scalar_lea.vmem %s5885_s1, %s3464_s0  ;;  %s5296_s4 = scalar_lea.vmem %s5886_s26, %s3464_s0 }
 0x1e5   : > { %s5301_s28 = scalar_lea.vmem %s5887_s21, %s3464_s0  ;;  %s5306_s14 = scalar_lea.vmem %s5889_s12, %s3464_s0 }
 0x1e6   : > { %5888 = sst [smem:[#allocation53_spill]] %s5301_s28  ;;  %s5311_s27 = scalar_lea.vmem %s5890_s18, %s3464_s0 }
 0x1e7   : > { %5891 = sst [smem:[#allocation54_spill]] %s5311_s27  ;;  %s1339_s26 = scalar_lea.vmem %s5892_s7, %s5281_s25 }
 0x1e8   : > { %s5320_s24 = scalar_lea.vmem %s5893_s15, %s3464_s0  ;;  %s3470_s12 = sshll.u32 %s5281_s25, 6 }
 0x1e9   : > { %s1355_s6 = scalar_lea.vmem %s5895_s8, %s5281_s25  ;;  %s5896_s27 = sld [smem:[#allocation77_spill]] }
 0x1ea   : > { %s5338_s1 = scalar_lea.vmem [#allocation20], %s5897_s2  ;;  %1360 = sbr.rel (%p3401_p1) target bundleno = 497 (0x1f1), region = 180 }
 0x1ef   : > { %s5334_s28 = scalar_lea.vmem %s5896_s27, %s3470_s12 }
 0x1f1 PF: > { %v5342_v1 = vld [vmem:[#allocation2] sm:$0xff]  ;;  %vm1367_vm1 = vcmask 261120   ;;  %v4508_v9 = vmov 0.0   ;;  %vm4509_vm2 = vmmov 0   ;;  %v3878_v10 = vld [vmem:[%s5291_s3 + $0x8] sm:$0xff]   ;;  %s5898_s13 = scalar_lea.vmem [#allocation11], %s5214_s9 }
 0x1f2   : > { %v1368_v2 = vsel %vm1367_vm1, %v5342_v1, 0.0  ;;  %v3877_v8 = vld [vmem:[%s5291_s3] sm:$0xff]   ;;  %3530 = vmatprep.subr.bf16.mxu1 %v4508_v9  ;;  %3534 = vmatprep.mubr.msk.bf16.mxu1 %vm4509_vm2, %v4508_v9  ;;  %s5899_s15 = scalar_lea.vmem [#allocation12], %s5214_s9  ;;  %s5900_s17 = scalar_lea.vmem [#allocation13], %s5214_s9  ;;  %vm1481_vm3 = vcmask 64512   ;;  %vm1728_vm4 = vcmask 1043456  }
 0x1f3   : > { %1369 = vadd.xlane.f32.xlu0 %v1368_v2  ;;  %3531 = vmatpush3.bf16.msra.mxu1 %v3877_v8  ;;  %v3402_v15 = vld [vmem:[%s5898_s13] ss:$0 sm:$0xff]  ;;  %s4510_s8 = smov 104   ;;  %s4511_s16 = smov 120   ;;  %vm1929_vm5 = vcmask 130048   ;;  %vm1931_vm6 = vcmask 195584  }
 0x1f4   : > { %3556 = vmatprep.subr.bf16.mxu0 %v4508_v9  ;;  %3532 = vmatprep.subr.bf16.mxu1 %v4508_v9  ;;  %v3403_v17 = vld [vmem:[%s5899_s15] ss:$0 sm:$0xff]  ;;  %s4512_s23 = smov 112   ;;  %s4513_s3 = smov 96  }
 0x1f5   : > { %3558 = vmatprep.mubr.msk.bf16.mxu0 %vm4509_vm2, %v4508_v9  ;;  %v3404_v21 = vld [vmem:[%s5900_s17] ss:$0 sm:$0xff]  ;;  %s4514_s20 = smov 64   ;;  %s4515_s0 = smov 8  }
 0x1f6   : > { %v1463_v42 = vld [vmem:[#allocation8] sm:$0xff]  ;;  %s4516_s27 = smov 16   ;;  %s4517_s7 = smov 24  }
 0x1f7   : > { %3533 = vmatpush3.bf16.msra.mxu1 %v3878_v10  ;;  %s5902_s22 = sld [smem:[#allocation53_spill]]  ;;  %s5905_s21 = scalar_lea.vmem [#allocation18], %s5214_s9 }
 0x1f8   : > { %3538 = vmatprep.subr.bf16.mxu1 %v4508_v9  ;;  %s5906_s5 = scalar_lea.vmem [#allocation17], %s5214_s9  ;;  %s5907_s12 = sld [smem:[#allocation54_spill]] }
 0x1f9   : > { %s5908_s10 = scalar_lea.vmem [#allocation19], %s5214_s9  ;;  %s5909_s19 = sld [smem:[#allocation73_spill]] }
 0x1ff   : > { %s5910_s18 = scalar_lea.vmem %s5909_s19, %s5281_s25 }
 0x280   : > { %v1370_v3 = vpop.xlane.xlu0 %1369 }
 0x281   : > { %v1372_v4 = vmul.f32 0.03125, %v1370_v3 }
 0x283   : > { %v1373_v5 = vsub.f32 %v5342_v1, %v1372_v4 }
 0x285   : > { %v1374_v6 = vmul.f32 %v1373_v5, %v1373_v5 }
 0x287   : > { %v1375_v7 = vsel %vm1367_vm1, %v1374_v6, 0.0 }
 0x288   : > { %1376 = vadd.xlane.f32.xlu0 %v1375_v7 }
 0x315   : > { %v1377_v11 = vpop.xlane.xlu0 %1376 }
 0x316   : > { %v1378_v12 = vmul.f32 0.03125, %v1377_v11 }
 0x318   : > { %v1379_v13 = vadd.f32 1e-06, %v1378_v12 }
 0x31a   : > { %3897 = vrsqrt.f32 %v1379_v13 }
 0x324   : > { %v3898_v14 = vpop.eup %3897 }
 0x325   : > { %v1381_v16 = vmul.f32 %v3898_v14, %v1373_v5 }
 0x327   : > { %v1388_v18 = vmul.f32 %v3402_v15, %v1381_v16 }
 0x329   : > { %v1395_v19 = vadd.f32 %v3403_v17, %v1388_v18 }
 0x32b   : > { %v1396_v20 = vpack.c.bf16 %v1395_v19, %v1395_v19 }
 0x32d   : > { %3535 = vmatmul.mubr.msk.bf16.vlgmr.msra.gmra.mrb[0].mxu1 %vm1367_vm1, %v1396_v20 }
 0x32e   : > { %3540 = vmatprep.mubr.msk.bf16.mxu1 %vm4509_vm2, %v4508_v9 }
 0x400   : > { %v1457_v22 = vpop.f32.mrb[0].mxu1 }
 0x401   : > { %v1458_v23 = vadd.f32 %v3404_v21, %v1457_v22  ;;  %v3536_v24 = vpop.f32.mrb[1].mxu1 }
 0x402   : > { %v1460_v25 = vpop.f32.mrb[2].mxu1 }
 0x403   : > { %1471 = vrot.lane.b32.xlu0 %v1458_v23, %s4510_s8  ;;  %1465 = vrot.lane.b32.xlu1 %v1458_v23, %s4511_s16  ;;  %v3537_v26 = vpop.f32.mrb[3].mxu1  ;;  %v5370_v27 = vpack.c.bf16 %v1458_v23, %v1458_v23 }
 0x407   : > { %1468 = vrot.lane.b32.xlu1 %v1458_v23, %s4512_s23 }
 0x40b   : > { %1479 = vrot.lane.b32.xlu1 %v5370_v27, %s4513_s3 }
 0x475   : > { %v1466_v28 = vpop.permute.xlu1 %1465  ;;  %v1472_v32 = vpop.permute.xlu0 %1471 }
 0x476   : > { %v5374_v29 = vpack.c.bf16 %v1466_v28, %v1466_v28  ;;  %v5382_v34 = vpack.c.bf16 %v1472_v32, %v1472_v32 }
 0x478   : > { %1529 = vrot.lane.b32.xlu1 %v5374_v29, %s4513_s3 }
 0x479   : > { %v1469_v30 = vpop.permute.xlu1 %1468 }
 0x47a   : > { %v5378_v31 = vpack.c.bf16 %v1469_v30, %v1469_v30 }
 0x47c   : > { %1578 = vrot.lane.b32.xlu1 %v5378_v31, %s4513_s3 }
 0x47d   : > { %v1480_v33 = vpop.permute.xlu1 %1479 }
 0x47e   : > { %v1486_v35 = vsel %vm1481_vm3, %v1480_v33, 0 }
 0x47f   : > { %3539 = vmatpush3.bf16.xpose.msra.mxu1 %v1486_v35 }
 0x480   : > { %1627 = vrot.lane.b32.xlu1 %v5382_v34, %s4513_s3  ;;  %3544 = vmatprep.subr.bf16.mxu1 %v4508_v9 }
 0x486   : > { %3541 = vmatmul.mubr.msk.bf16.vlgmr.msra.gmra.mrb[4].mxu1 %vm1481_vm3, %v5370_v27 }
 0x487   : > { %3546 = vmatprep.mubr.msk.bf16.mxu1 %vm4509_vm2, %v4508_v9 }
 0x4ea   : > { %v1530_v36 = vpop.permute.xlu1 %1529 }
 0x4eb   : > { %v1535_v37 = vsel %vm1481_vm3, %v1530_v36, 0 }
 0x4ec   : > { %3545 = vmatpush3.bf16.xpose.msra.mxu1 %v1535_v37 }
 0x4ed   : > { %3550 = vmatprep.subr.bf16.mxu1 %v4508_v9 }
 0x4ee   : > { %v1579_v38 = vpop.permute.xlu1 %1578 }
 0x4ef   : > { %v1584_v40 = vsel %vm1481_vm3, %v1579_v38, 0 }
 0x4f2   : > { %v1628_v39 = vpop.permute.xlu1 %1627 }
 0x4f3   : > { %3547 = vmatmul.mubr.msk.bf16.vlgmr.msra.gmra.mrb[8].mxu1 %vm1481_vm3, %v5374_v29  ;;  %v1633_v41 = vsel %vm1481_vm3, %v1628_v39, 0 }
 0x4f4   : > { %3551 = vmatpush3.bf16.xpose.msra.mxu1 %v1584_v40  ;;  %3557 = vmatpush3.bf16.xpose.msra.mxu0 %v1633_v41 }
 0x4f5   : > { %3552 = vmatprep.mubr.msk.bf16.mxu1 %vm4509_vm2, %v4508_v9  ;;  %3562 = vmatprep.subr.bf16.mxu1 %v4508_v9 }
 0x4f6   : > { %3568 = vmatprep.subr.bf16.mxu0 %v4508_v9 }
 0x4fb   : > { %3553 = vmatmul.mubr.msk.bf16.vlgmr.msra.gmra.mrb[12].mxu1 %vm1481_vm3, %v5378_v31  ;;  %3559 = vmatmul.mubr.msk.bf16.vlgmr.msra.gmra.mrb[0].mxu0 %vm1481_vm3, %v5382_v34 }
 0x4fc   : > { %3564 = vmatprep.mubr.msk.bf16.mxu1 %vm4509_vm2, %v4508_v9  ;;  %3570 = vmatprep.mubr.msk.bf16.mxu0 %vm4509_vm2, %v4508_v9 }
 0x559   : > { %v1522_v43 = vpop.f32.mrb[4].mxu1 }
 0x55a   : > { %v1523_v44 = vadd.f32 %v1522_v43, %v1463_v42  ;;  %v3542_v45 = vpop.f32.mrb[5].mxu1 }
 0x55b   : > { %v1525_v46 = vpop.f32.mrb[6].mxu1 }
 0x55c   : > { %v3543_v47 = vpop.f32.mrb[7].mxu1  ;;  %v1675_v48 = vsel %vm1481_vm3, %v1523_v44, -inf }
 0x55d   : > { %1676 = vmax.xlane.f32.xlu1 %v1675_v48 }
 0x5c6   : > { %v1571_v49 = vpop.f32.mrb[8].mxu1 }
 0x5c7   : > { %v1572_v50 = vadd.f32 %v1571_v49, %v1463_v42  ;;  %v3548_v51 = vpop.f32.mrb[9].mxu1 }
 0x5c8   : > { %v1574_v52 = vpop.f32.mrb[10].mxu1 }
 0x5c9   : > { %v3549_v53 = vpop.f32.mrb[11].mxu1  ;;  %v1678_v54 = vsel %vm1481_vm3, %v1572_v50, -inf }
 0x5ca   : > { %1679 = vmax.xlane.f32.xlu0 %v1678_v54  ;;  %v3879_v53 = vld [vmem:[%s5296_s4] sm:$0xff]   ;;  %v3880_v54 = vld [vmem:[%s5296_s4 + $0x8] sm:$0xff]   ;;  %s5901_s4 = scalar_lea.vmem [#allocation14], %s5214_s9 }
 0x5ce   : > { %v1620_v55 = vpop.f32.mrb[12].mxu1  ;;  %v1669_v56 = vpop.f32.mrb[0].mxu0 }
 0x5cf   : > { %v1621_v57 = vadd.f32 %v1620_v55, %v1463_v42  ;;  %v1670_v58 = vadd.f32 %v1669_v56, %v1463_v42  ;;  %v3554_v59 = vpop.f32.mrb[13].mxu1  ;;  %v3560_v60 = vpop.f32.mrb[1].mxu0 }
 0x5d0   : > { %v1623_v61 = vpop.f32.mrb[14].mxu1  ;;  %v1672_v62 = vpop.f32.mrb[2].mxu0 }
 0x5d1   : > { %v3555_v63 = vpop.f32.mrb[15].mxu1  ;;  %v3561_v0 = vpop.f32.mrb[3].mxu0  ;;  %v1684_v2 = vsel %vm1481_vm3, %v1670_v58, -inf  ;;  %v1681_v3 = vsel %vm1481_vm3, %v1621_v57, -inf }
 0x5d2   : > { %1685 = vmax.xlane.f32.xlu0 %v1684_v2  ;;  %1682 = vmax.xlane.f32.xlu1 %v1681_v3 }
 0x5e3   : > { %1723 = vrot.lane.b32.xlu1 %v5370_v27, %s4514_s20 }
 0x5ea   : > { %v1677_v4 = vpop.xlane.xlu1 %1676 }
 0x5eb   : > { %v1687_v5 = vsub.f32 %v1523_v44, %v1677_v4 }
 0x5ed   : > { %v1691_v6 = vmul.f32 1.442695, %v1687_v5 }
 0x5ef   : > { %3899 = vpow2.f32 %v1691_v6 }
 0x5f9   : > { %v3900_v7 = vpop.eup %3899 }
 0x5fa   : > { %v1699_v8 = vsel %vm1481_vm3, %v3900_v7, 0.0 }
 0x607   : > { %1700 = vadd.xlane.f32.xlu1 %v1699_v8 }
 0x618   : > { %1820 = vrot.lane.b32.xlu1 %v5378_v31, %s4514_s20 }
 0x657   : > { %v1680_v10 = vpop.xlane.xlu0 %1679 }
 0x658   : > { %v1688_v11 = vsub.f32 %v1572_v50, %v1680_v10 }
 0x65a   : > { %v1693_v12 = vmul.f32 1.442695, %v1688_v11 }
 0x65c   : > { %3901 = vpow2.f32 %v1693_v12 }
 0x65f   : > { %v1686_v13 = vpop.xlane.xlu0 %1685  ;;  %v1683_v14 = vpop.xlane.xlu1 %1682 }
 0x660   : > { %v1690_v15 = vsub.f32 %v1670_v58, %v1686_v13  ;;  %v1689_v16 = vsub.f32 %v1621_v57, %v1683_v14  ;;  %v3419_v13 = vld [vmem:[%s5901_s4] ss:$0 sm:$0xff] }
 0x662   : > { %v1697_v17 = vmul.f32 1.442695, %v1690_v15  ;;  %v1695_v18 = vmul.f32 1.442695, %v1689_v16 }
 0x663   : > { %v1724_v19 = vpop.permute.xlu1 %1723 }
 0x664   : > { %3903 = vpow2.f32 %v1697_v17  ;;  %v1730_v20 = vsel %vm1728_vm4, %v1724_v19, 0 }
 0x665   : > { %3905 = vpow2.f32 %v1695_v18  ;;  %3563 = vmatpush3.bf16.msra.mxu1 %v1730_v20 }
 0x666   : > { %v3902_v21 = vpop.eup %3901  ;;  %3574 = vmatprep.subr.bf16.mxu1 %v4508_v9 }
 0x667   : > { %v1702_v22 = vsel %vm1481_vm3, %v3902_v21, 0.0 }
 0x668   : > { %1703 = vadd.xlane.f32.xlu0 %v1702_v22 }
 0x66e   : > { %v3904_v23 = vpop.eup %3903 }
 0x66f   : > { %v3906_v24 = vpop.eup %3905  ;;  %v1708_v25 = vsel %vm1481_vm3, %v3904_v23, 0.0 }
 0x670   : > { %1709 = vadd.xlane.f32.xlu0 %v1708_v25  ;;  %v1705_v26 = vsel %vm1481_vm3, %v3906_v24, 0.0  ;;  %v3882_v25 = vld [vmem:[%s5306_s14 + $0x8] sm:$0xff]  }
 0x671   : > { %1706 = vadd.xlane.f32.xlu1 %v1705_v26  ;;  %v2098_v26 = vld [vmem:[%s5197_s30] sm:$0xf]  ;;  %s5903_s30 = scalar_lea.vmem [#allocation15], %s5214_s9 }
 0x682   : > { %1868 = vrot.lane.b32.xlu1 %v5382_v34, %s4514_s20 }
 0x686   : > { %1772 = vrot.lane.b32.xlu0 %v5374_v29, %s4514_s20 }
 0x694   : > { %v1701_v27 = vpop.xlane.xlu1 %1700 }
 0x695   : > { %3907 = vrcp.f32 %v1701_v27  ;;  %v3883_v27 = vld [vmem:[%s5902_s22] sm:$0xff]  }
 0x698   : > { %v1821_v31 = vpop.permute.xlu1 %1820 }
 0x699   : > { %v1826_v33 = vsel %vm1728_vm4, %v1821_v31, 0 }
 0x69f   : > { %v3908_v28 = vpop.eup %3907 }
 0x6a0   : > { %v1715_v30 = vmul.f32 %v3908_v28, %v3900_v7  ;;  %v3884_v28 = vld [vmem:[%s5902_s22 + $0x8] sm:$0xff]  }
 0x6a2   : > { %v1719_v32 = vpack.c.bf16 %v1715_v30, %v1715_v30 }
 0x6a4   : > { %3565 = vmatmul.mubr.msk.bf16.vlgmr.msra.gmra.mrb[16].mxu1 %vm1481_vm3, %v1719_v32 }
 0x6a5   : > { %3575 = vmatpush3.bf16.msra.mxu1 %v1826_v33  ;;  %3576 = vmatprep.mubr.msk.bf16.mxu1 %vm4509_vm2, %v4508_v9 }
 0x6a6   : > { %3586 = vmatprep.subr.bf16.mxu1 %v4508_v9 }
 0x6f5   : > { %v1704_v34 = vpop.xlane.xlu0 %1703 }
 0x6f6   : > { %3909 = vrcp.f32 %v1704_v34  ;;  %v3420_v34 = vld [vmem:[%s5903_s30] ss:$0 sm:$0xff] }
 0x6fd   : > { %v1710_v35 = vpop.xlane.xlu0 %1709 }
 0x6fe   : > { %3911 = vrcp.f32 %v1710_v35  ;;  %v1707_v29 = vpop.xlane.xlu1 %1706 }
 0x6ff   : > { %3913 = vrcp.f32 %v1707_v29 }
 0x700   : > { %v3910_v36 = vpop.eup %3909 }
 0x701   : > { %v1716_v37 = vmul.f32 %v3910_v36, %v3902_v21  ;;  %v1773_v38 = vpop.permute.xlu0 %1772 }
 0x702   : > { %v1778_v39 = vsel %vm1728_vm4, %v1773_v38, 0  ;;  %v1869_v40 = vpop.permute.xlu1 %1868 }
 0x703   : > { %3569 = vmatpush3.bf16.msra.mxu0 %v1778_v39  ;;  %v1720_v41 = vpack.c.bf16 %v1716_v37, %v1716_v37  ;;  %v1874_v42 = vsel %vm1728_vm4, %v1869_v40, 0  ;;  %v3426_v39 = vld [vmem:[%s5905_s21] ss:$0 sm:$0xff] }
 0x704   : > { %3580 = vmatprep.subr.bf16.mxu0 %v4508_v9 }
 0x706   : > { %3571 = vmatmul.mubr.msk.bf16.vlgmr.msra.gmra.mrb[4].mxu0 %vm1481_vm3, %v1720_v41 }
 0x707   : > { %3581 = vmatpush3.bf16.msra.mxu0 %v1874_v42  ;;  %3582 = vmatprep.mubr.msk.bf16.mxu0 %vm4509_vm2, %v4508_v9 }
 0x708   : > { %v3912_v43 = vpop.eup %3911  ;;  %3594 = vmatprep.subr.bf16.mxu0 %v4508_v9 }
 0x709   : > { %v3914_v44 = vpop.eup %3913  ;;  %v1718_v45 = vmul.f32 %v3912_v43, %v3904_v23 }
 0x70a   : > { %v1717_v46 = vmul.f32 %v3914_v44, %v3906_v24  ;;  %v3881_v24 = vld [vmem:[%s5306_s14] sm:$0xff]   ;;  %s5904_s14 = scalar_lea.vmem [#allocation16], %s5214_s9 }
 0x70b   : > { %v1722_v47 = vpack.c.bf16 %v1718_v45, %v1718_v45  ;;  %v3421_v29 = vld [vmem:[%s5904_s14] ss:$0 sm:$0xff] }
 0x70c   : > { %v1721_v48 = vpack.c.bf16 %v1717_v46, %v1717_v46 }
 0x70e   : > { %3577 = vmatmul.mubr.msk.bf16.vlgmr.msra.gmra.mrb[20].mxu1 %vm1481_vm3, %v1721_v48  ;;  %3583 = vmatmul.mubr.msk.bf16.vlgmr.msra.gmra.mrb[8].mxu0 %vm1481_vm3, %v1722_v47 }
 0x70f   : > { %3590 = vmatprep.mubr.msk.bf16.mxu1 %vm4509_vm2, %v4508_v9  ;;  %3598 = vmatprep.mubr.msk.bf16.mxu0 %vm4509_vm2, %v4508_v9 }
 0x710   : > { %3587 = vmatpush3.bf16.msra.mxu1 %v3879_v53  ;;  %3595 = vmatpush3.bf16.msra.mxu0 %v3883_v27 }
 0x711   : > { %3588 = vmatprep.subr.bf16.mxu1 %v4508_v9  ;;  %3596 = vmatprep.subr.bf16.mxu0 %v4508_v9 }
 0x714   : > { %3589 = vmatpush3.bf16.msra.mxu1 %v3880_v54  ;;  %3597 = vmatpush3.bf16.msra.mxu0 %v3884_v28 }
 0x715   : > { %3602 = vmatprep.subr.bf16.mxu1 %v4508_v9  ;;  %3610 = vmatprep.subr.bf16.mxu0 %v4508_v9 }
 0x777   : > { %v1766_v49 = vpop.f32.mrb[16].mxu1 }
 0x778   : > { %v3566_v50 = vpop.f32.mrb[17].mxu1 }
 0x779   : > { %v1769_v51 = vpop.f32.mrb[18].mxu1 }
 0x77a   : > { %v3567_v52 = vpop.f32.mrb[19].mxu1  ;;  %v3422_v51 = vld [vmem:[%s5906_s5] ss:$0 sm:$0xff] }
 0x7d9   : > { %v1814_v55 = vpop.f32.mrb[4].mxu0 }
 0x7da   : > { %1917 = vrot.lane.b32.xlu0 %v1814_v55, %s4515_s0  ;;  %v3572_v56 = vpop.f32.mrb[5].mxu0 }
 0x7db   : > { %v1817_v57 = vpop.f32.mrb[6].mxu0 }
 0x7dc   : > { %v3573_v58 = vpop.f32.mrb[7].mxu0 }
 0x7e1   : > { %v1862_v59 = vpop.f32.mrb[20].mxu1  ;;  %v1910_v60 = vpop.f32.mrb[8].mxu0 }
 0x7e2   : > { %1921 = vrot.lane.b32.xlu1 %v1862_v59, %s4516_s27  ;;  %v3578_v61 = vpop.f32.mrb[21].mxu1  ;;  %1925 = vrot.lane.b32.xlu0 %v1910_v60, %s4517_s7  ;;  %v3584_v62 = vpop.f32.mrb[9].mxu0 }
 0x7e3   : > { %v1865_v63 = vpop.f32.mrb[22].mxu1  ;;  %v1913_v0 = vpop.f32.mrb[10].mxu0 }
 0x7e4   : > { %v3579_v2 = vpop.f32.mrb[23].mxu1  ;;  %v3585_v3 = vpop.f32.mrb[11].mxu0 }
 0x84c   : > { %v1918_v4 = vpop.permute.xlu0 %1917 }
 0x84d   : > { %v1928_v5 = vsel %vm1481_vm3, %v1766_v49, %v1918_v4 }
 0x854   : > { %v1922_v6 = vpop.permute.xlu1 %1921  ;;  %v1926_v7 = vpop.permute.xlu0 %1925 }
 0x855   : > { %v1930_v8 = vsel %vm1929_vm5, %v1928_v5, %v1922_v6  ;;  %v2165_v6 = vld [vmem:[#allocation9] sm:$0xff] }
 0x856   : > { %v1932_v10 = vsel %vm1931_vm6, %v1930_v8, %v1926_v7 }
 0x857   : > { %v1933_v11 = vpack.c.bf16 %v1932_v10, %v1932_v10 }
 0x859   : > { %3591 = vmatmul.mubr.msk.bf16.vlgmr.msra.gmra.mrb[24].mxu1 %vm1367_vm1, %v1933_v11 }
 0x85a   : > { %3606 = vmatprep.mubr.msk.bf16.mxu1 %vm4509_vm2, %v4508_v9  ;;  %3603 = vmatpush3.bf16.msra.mxu1 %v3881_v24 }
 0x85b   : > { %3604 = vmatprep.subr.bf16.mxu1 %v4508_v9 }
 0x85e   : > { %3605 = vmatpush3.bf16.msra.mxu1 %v3882_v25 }
 0x85f   : > { %3616 = vmatprep.subr.bf16.mxu1 %v4508_v9 }
 0x861   : > { %3607 = vmatmul.mubr.msk.bf16.vlgmr.msra.gmra.mrb[28].mxu1 %vm1367_vm1, %v2098_v26 }
 0x862   : > { %3618 = vmatprep.mubr.msk.bf16.mxu1 %vm4509_vm2, %v4508_v9 }
 0x92c   : > { %v1987_v12 = vpop.f32.mrb[24].mxu1 }
 0x92d   : > { %v1993_v14 = vadd.f32 %v1987_v12, %v5342_v1  ;;  %v3592_v15 = vpop.f32.mrb[25].mxu1 }
 0x92e   : > { %v1990_v16 = vpop.f32.mrb[26].mxu1 }
 0x92f   : > { %v5462_v17 = vadd.f32 %v3419_v13, %v1993_v14  ;;  %v3593_v18 = vpop.f32.mrb[27].mxu1 }
 0x931   : > { %v2004_v19 = vsel %vm1367_vm1, %v5462_v17, 0.0 }
 0x932   : > { %2005 = vadd.xlane.f32.xlu1 %v2004_v19 }
 0x934   : > { %v2159_v40 = vpop.f32.mrb[28].mxu1 }
 0x935   : > { %v2160_v41 = vadd.f32 %v3426_v39, %v2159_v40  ;;  %v3608_v42 = vpop.f32.mrb[29].mxu1 }
 0x936   : > { %v2162_v43 = vpop.f32.mrb[30].mxu1 }
 0x937   : > { %v3609_v44 = vpop.f32.mrb[31].mxu1  ;;  %v5490_v45 = vpack.c.bf16 %v2160_v41, %v2160_v41 }
 0x939   : > { %v2198_v46 = vsel %vm1481_vm3, %v5490_v45, 0 }
 0x943   : > { %2184 = vrot.lane.b32.xlu1 %v2160_v41, %s4512_s23 }
 0x9bf   : > { %v2006_v20 = vpop.xlane.xlu1 %2005 }
 0x9c0   : > { %v2007_v21 = vmul.f32 0.03125, %v2006_v20 }
 0x9c2   : > { %v2008_v22 = vsub.f32 %v5462_v17, %v2007_v21 }
 0x9c3   : > { %v2185_v50 = vpop.permute.xlu1 %2184 }
 0x9c4   : > { %v2009_v23 = vmul.f32 %v2008_v22, %v2008_v22  ;;  %v5504_v52 = vpack.c.bf16 %v2185_v50, %v2185_v50 }
 0x9c6   : > { %v2010_v1 = vsel %vm1367_vm1, %v2009_v23, 0.0  ;;  %v2290_v59 = vsel %vm1481_vm3, %v5504_v52, 0 }
 0x9c7   : > { %2011 = vadd.xlane.f32.xlu0 %v2010_v1 }
 0x9dd   : > { %2181 = vrot.lane.b32.xlu0 %v2160_v41, %s4511_s16 }
 0x9e1   : > { %2187 = vrot.lane.b32.xlu0 %v2160_v41, %s4510_s8 }
 0xa54   : > { %v2012_v30 = vpop.xlane.xlu0 %2011 }
 0xa55   : > { %v2013_v31 = vmul.f32 0.03125, %v2012_v30 }
 0xa57   : > { %v2014_v32 = vadd.f32 1e-06, %v2013_v31 }
 0xa58   : > { %v2182_v47 = vpop.permute.xlu0 %2181 }
 0xa59   : > { %3915 = vrsqrt.f32 %v2014_v32  ;;  %v5497_v48 = vpack.c.bf16 %v2182_v47, %v2182_v47 }
 0xa5b   : > { %v2244_v49 = vsel %vm1481_vm3, %v5497_v48, 0 }
 0xa5c   : > { %3617 = vmatpush3.bf16.xpose.msra.mxu1 %v2244_v49  ;;  %v2188_v60 = vpop.permute.xlu0 %2187 }
 0xa5d   : > { %3628 = vmatprep.subr.bf16.mxu1 %v4508_v9  ;;  %v5515_v61 = vpack.c.bf16 %v2188_v60, %v2188_v60 }
 0xa5f   : > { %v2336_v0 = vsel %vm1481_vm3, %v5515_v61, 0 }
 0xa63   : > { %v3916_v33 = vpop.eup %3915 }
 0xa64   : > { %v2016_v35 = vmul.f32 %v3916_v33, %v2008_v22 }
 0xa66   : > { %v2023_v36 = vmul.f32 %v3420_v34, %v2016_v35 }
 0xa68   : > { %v2030_v37 = vadd.f32 %v3421_v29, %v2023_v36 }
 0xa6a   : > { %v2031_v38 = vpack.c.bf16 %v2030_v37, %v2030_v37 }
 0xa6c   : > { %3599 = vmatmul.mubr.msk.bf16.vlgmr.msra.gmra.mrb[12].mxu0 %vm1367_vm1, %v2031_v38 }
 0xa6d   : > { %3612 = vmatprep.mubr.msk.bf16.mxu0 %vm4509_vm2, %v4508_v9  ;;  %3611 = vmatpush3.bf16.xpose.msra.mxu0 %v2198_v46 }
 0xa6e   : > { %3622 = vmatprep.subr.bf16.mxu0 %v4508_v9 }
 0xb3f   : > { %v2092_v53 = vpop.f32.mrb[12].mxu0 }
 0xb40   : > { %v2093_v54 = vadd.f32 %v3422_v51, %v2092_v53  ;;  %v3600_v55 = vpop.f32.mrb[13].mxu0 }
 0xb41   : > { %v2095_v56 = vpop.f32.mrb[14].mxu0 }
 0xb42   : > { %v2176_v57 = vpack.c.bf16 %v2093_v54, %v2093_v54  ;;  %v3601_v58 = vpop.f32.mrb[15].mxu0  ;;  %2167 = vrot.lane.b32.xlu1 %v2093_v54, %s4511_s16  ;;  %2173 = vrot.lane.b32.xlu0 %v2093_v54, %s4510_s8 }
 0xb44   : > { %3613 = vmatmul.mubr.msk.bf16.vlgmr.msra.gmra.mrb[16].mxu0 %vm1481_vm3, %v2176_v57 }
 0xb45   : > { %3623 = vmatpush3.bf16.xpose.msra.mxu0 %v2290_v59  ;;  %3624 = vmatprep.mubr.msk.bf16.mxu0 %vm4509_vm2, %v4508_v9 }
 0xb46   : > { %2170 = vrot.lane.b32.xlu1 %v2093_v54, %s4512_s23  ;;  %3634 = vmatprep.subr.bf16.mxu0 %v4508_v9 }
 0xbb4   : > { %v2168_v62 = vpop.permute.xlu1 %2167  ;;  %v2174_v4 = vpop.permute.xlu0 %2173 }
 0xbb5   : > { %v2177_v63 = vpack.c.bf16 %v2168_v62, %v2168_v62  ;;  %v2179_v5 = vpack.c.bf16 %v2174_v4, %v2174_v4 }
 0xbb7   : > { %3619 = vmatmul.mubr.msk.bf16.vlgmr.msra.gmra.mrb[32].mxu1 %vm1481_vm3, %v2177_v63 }
 0xbb8   : > { %3629 = vmatpush3.bf16.xpose.msra.mxu1 %v2336_v0  ;;  %v2171_v2 = vpop.permute.xlu1 %2170  ;;  %3630 = vmatprep.mubr.msk.bf16.mxu1 %vm4509_vm2, %v4508_v9 }
 0xbb9   : > { %v2178_v3 = vpack.c.bf16 %v2171_v2, %v2171_v2  ;;  %3640 = vmatprep.subr.bf16.mxu1 %v4508_v9 }
 0xbbb   : > { %3625 = vmatmul.mubr.msk.bf16.vlgmr.msra.gmra.mrb[20].mxu0 %vm1481_vm3, %v2178_v3 }
 0xbbc   : > { %3636 = vmatprep.mubr.msk.bf16.mxu0 %vm4509_vm2, %v4508_v9 }
 0xbbf   : > { %3631 = vmatmul.mubr.msk.bf16.vlgmr.msra.gmra.mrb[36].mxu1 %vm1481_vm3, %v2179_v5 }
 0xbc0   : > { %3642 = vmatprep.mubr.msk.bf16.mxu1 %vm4509_vm2, %v4508_v9 }
 0xc17   : > { %v2234_v7 = vpop.f32.mrb[16].mxu0 }
 0xc18   : > { %v2235_v8 = vadd.f32 %v2234_v7, %v2165_v6  ;;  %v3614_v10 = vpop.f32.mrb[17].mxu0 }
 0xc19   : > { %v2237_v11 = vpop.f32.mrb[18].mxu0 }
 0xc1a   : > { %v3615_v12 = vpop.f32.mrb[19].mxu0  ;;  %v2378_v13 = vsel %vm1481_vm3, %v2235_v8, -inf }
 0xc1b   : > { %2379 = vmax.xlane.f32.xlu1 %v2378_v13 }
 0xc8a   : > { %v2280_v14 = vpop.f32.mrb[32].mxu1 }
 0xc8b   : > { %v2281_v15 = vadd.f32 %v2280_v14, %v2165_v6  ;;  %v3620_v16 = vpop.f32.mrb[33].mxu1 }
 0xc8c   : > { %v2283_v18 = vpop.f32.mrb[34].mxu1 }
 0xc8d   : > { %v3621_v19 = vpop.f32.mrb[35].mxu1  ;;  %v2381_v20 = vsel %vm1481_vm3, %v2281_v15, -inf }
 0xc8e   : > { %v2326_v21 = vpop.f32.mrb[20].mxu0  ;;  %2382 = vmax.xlane.f32.xlu0 %v2381_v20  ;;  %v3885_v19 = vld [vmem:[%s5907_s12] sm:$0xff]   ;;  %v3886_v20 = vld [vmem:[%s5907_s12 + $0x8] sm:$0xff]  }
 0xc8f   : > { %v2327_v22 = vadd.f32 %v2326_v21, %v2165_v6  ;;  %v3626_v23 = vpop.f32.mrb[21].mxu0 }
 0xc90   : > { %v2329_v1 = vpop.f32.mrb[22].mxu0 }
 0xc91   : > { %v3627_v24 = vpop.f32.mrb[23].mxu0  ;;  %v2384_v25 = vsel %vm1481_vm3, %v2327_v22, -inf }
 0xc92   : > { %2385 = vmax.xlane.f32.xlu0 %v2384_v25  ;;  %v2372_v26 = vpop.f32.mrb[36].mxu1 }
 0xc93   : > { %v2373_v27 = vadd.f32 %v2372_v26, %v2165_v6  ;;  %v3632_v28 = vpop.f32.mrb[37].mxu1 }
 0xc94   : > { %v2375_v30 = vpop.f32.mrb[38].mxu1 }
 0xc95   : > { %v3633_v31 = vpop.f32.mrb[39].mxu1  ;;  %v2387_v32 = vsel %vm1481_vm3, %v2373_v27, -inf }
 0xc96   : > { %2388 = vmax.xlane.f32.xlu1 %v2387_v32 }
 0xca7   : > { %2476 = vrot.lane.b32.xlu1 %v5497_v48, %s4513_s3 }
 0xca8   : > { %2427 = vrot.lane.b32.xlu0 %v5490_v45, %s4513_s3  ;;  %v2380_v33 = vpop.xlane.xlu1 %2379 }
 0xca9   : > { %v2390_v34 = vsub.f32 %v2235_v8, %v2380_v33 }
 0xcab   : > { %v2394_v35 = vmul.f32 1.442695, %v2390_v34 }
 0xcad   : > { %3917 = vpow2.f32 %v2394_v35 }
 0xcb7   : > { %v3918_v29 = vpop.eup %3917 }
 0xcb8   : > { %v2402_v36 = vsel %vm1481_vm3, %v3918_v29, 0.0 }
 0xcc7   : > { %2403 = vadd.xlane.f32.xlu0 %v2402_v36 }
 0xd1b   : > { %v2383_v37 = vpop.xlane.xlu0 %2382 }
 0xd1c   : > { %v2391_v38 = vsub.f32 %v2281_v15, %v2383_v37 }
 0xd1e   : > { %v2396_v39 = vmul.f32 1.442695, %v2391_v38 }
 0xd1f   : > { %v2386_v40 = vpop.xlane.xlu0 %2385 }
 0xd20   : > { %3919 = vpow2.f32 %v2396_v39  ;;  %v2392_v41 = vsub.f32 %v2327_v22, %v2386_v40  ;;  %v3441_v40 = vld [vmem:[%s5908_s10] ss:$0 sm:$0xff] }
 0xd22   : > { %v2398_v42 = vmul.f32 1.442695, %v2392_v41 }
 0xd23   : > { %v2428_v43 = vpop.permute.xlu0 %2427  ;;  %v2389_v44 = vpop.xlane.xlu1 %2388 }
 0xd24   : > { %3921 = vpow2.f32 %v2398_v42  ;;  %v2433_v45 = vsel %vm1728_vm4, %v2428_v43, 0  ;;  %v2393_v46 = vsub.f32 %v2373_v27, %v2389_v44 }
 0xd25   : > { %3635 = vmatpush3.bf16.msra.mxu0 %v2433_v45 }
 0xd26   : > { %v2400_v47 = vmul.f32 1.442695, %v2393_v46  ;;  %3646 = vmatprep.subr.bf16.mxu0 %v4508_v9 }
 0xd27   : > { %v2477_v48 = vpop.permute.xlu1 %2476 }
 0xd28   : > { %3923 = vpow2.f32 %v2400_v47  ;;  %v2482_v49 = vsel %vm1728_vm4, %v2477_v48, 0 }
 0xd29   : > { %3641 = vmatpush3.bf16.msra.mxu1 %v2482_v49 }
 0xd2a   : > { %v3920_v50 = vpop.eup %3919  ;;  %3652 = vmatprep.subr.bf16.mxu1 %v4508_v9 }
 0xd2b   : > { %v2405_v51 = vsel %vm1481_vm3, %v3920_v50, 0.0 }
 0xd2c   : > { %2406 = vadd.xlane.f32.xlu1 %v2405_v51  ;;  %v3887_v51 = vld [vmem:[%s5320_s24] sm:$0xff]  }
 0xd2e   : > { %v3922_v53 = vpop.eup %3921 }
 0xd2f   : > { %v2408_v54 = vsel %vm1481_vm3, %v3922_v53, 0.0 }
 0xd30   : > { %2409 = vadd.xlane.f32.xlu0 %v2408_v54  ;;  %v3889_v54 = vld [vmem:[%s5334_s28] sm:$0xff]  }
 0xd32   : > { %v3924_v55 = vpop.eup %3923 }
 0xd33   : > { %v2411_v56 = vsel %vm1481_vm3, %v3924_v55, 0.0 }
 0xd34   : > { %2412 = vadd.xlane.f32.xlu1 %v2411_v56  ;;  %v3891_v56 = vld [vmem:[%s5334_s28 + $0x10] sm:$0xff]  }
 0xd45   : > { %2525 = vrot.lane.b32.xlu1 %v5504_v52, %s4513_s3 }
 0xd46   : > { %2574 = vrot.lane.b32.xlu0 %v5515_v61, %s4513_s3 }
 0xd54   : > { %v2404_v57 = vpop.xlane.xlu0 %2403 }
 0xd55   : > { %3925 = vrcp.f32 %v2404_v57  ;;  %v3892_v57 = vld [vmem:[%s5334_s28 + $0x18] sm:$0xff]  }
 0xd5f   : > { %v3926_v58 = vpop.eup %3925 }
 0xd60   : > { %v2418_v59 = vmul.f32 %v3926_v58, %v3918_v29  ;;  %v3893_v58 = vld [vmem:[%s5334_s28 + $0x20] sm:$0xff]  }
 0xd62   : > { %v2422_v60 = vpack.c.bf16 %v2418_v59, %v2418_v59  ;;  %v3894_v59 = vld [vmem:[%s5334_s28 + $0x28] sm:$0xff]  }
 0xd64   : > { %3637 = vmatmul.mubr.msk.bf16.vlgmr.msra.gmra.mrb[24].mxu0 %vm1481_vm3, %v2422_v60 }
 0xd65   : > { %3648 = vmatprep.mubr.msk.bf16.mxu0 %vm4509_vm2, %v4508_v9 }
 0xdb9   : > { %v2407_v62 = vpop.xlane.xlu1 %2406 }
 0xdba   : > { %3927 = vrcp.f32 %v2407_v62 }
 0xdbd   : > { %v2410_v63 = vpop.xlane.xlu0 %2409 }
 0xdbe   : > { %3929 = vrcp.f32 %v2410_v63 }
 0xdc1   : > { %v2413_v0 = vpop.xlane.xlu1 %2412  ;;  %v2575_v61 = vpop.permute.xlu0 %2574 }
 0xdc2   : > { %3931 = vrcp.f32 %v2413_v0  ;;  %v2580_v8 = vsel %vm1728_vm4, %v2575_v61, 0 }
 0xdc4   : > { %v3928_v52 = vpop.eup %3927 }
 0xdc5   : > { %v2419_v2 = vmul.f32 %v3928_v52, %v3920_v50  ;;  %v2526_v3 = vpop.permute.xlu1 %2525  ;;  %v3442_v52 = vld [vmem:[%s5910_s18] ss:$0 sm:$0xff] }
 0xdc6   : > { %v2531_v4 = vsel %vm1728_vm4, %v2526_v3, 0  ;;  %v3443_v3 = vld [vmem:[%s1339_s26] ss:$0 sm:$0xff] }
 0xdc7   : > { %3647 = vmatpush3.bf16.msra.mxu0 %v2531_v4  ;;  %v2423_v5 = vpack.c.bf16 %v2419_v2, %v2419_v2 }
 0xdc8   : > { %v3930_v6 = vpop.eup %3929  ;;  %3658 = vmatprep.subr.bf16.mxu0 %v4508_v9 }
 0xdc9   : > { %v2420_v7 = vmul.f32 %v3930_v6, %v3922_v53  ;;  %3643 = vmatmul.mubr.msk.bf16.vlgmr.msra.gmra.mrb[40].mxu1 %vm1481_vm3, %v2423_v5  ;;  %v3888_v53 = vld [vmem:[%s5320_s24 + $0x8] sm:$0xff]   ;;  %v3895_v6 = vld [vmem:[%s5334_s28 + $0x30] sm:$0xff]  }
 0xdca   : > { %3653 = vmatpush3.bf16.msra.mxu1 %v2580_v8  ;;  %3654 = vmatprep.mubr.msk.bf16.mxu1 %vm4509_vm2, %v4508_v9  ;;  %v3444_v8 = vld [vmem:[%s1347_s11] ss:$0 sm:$0xff] }
 0xdcb   : > { %v2424_v10 = vpack.c.bf16 %v2420_v7, %v2420_v7  ;;  %3666 = vmatprep.subr.bf16.mxu1 %v4508_v9  ;;  %v3896_v7 = vld [vmem:[%s5334_s28 + $0x38] sm:$0xff]  }
 0xdcc   : > { %v3932_v11 = vpop.eup %3931 }
 0xdcd   : > { %v2421_v12 = vmul.f32 %v3932_v11, %v3924_v55  ;;  %3649 = vmatmul.mubr.msk.bf16.vlgmr.msra.gmra.mrb[28].mxu0 %vm1481_vm3, %v2424_v10  ;;  %v3890_v55 = vld [vmem:[%s5334_s28 + $0x8] sm:$0xff]   ;;  %s5914_s28 = sld [smem:[#allocation40_spill]] }
 0xdce   : > { %3662 = vmatprep.mubr.msk.bf16.mxu0 %vm4509_vm2, %v4508_v9  ;;  %3659 = vmatpush3.bf16.msra.mxu0 %v3885_v19 }
 0xdcf   : > { %v2425_v13 = vpack.c.bf16 %v2421_v12, %v2421_v12  ;;  %3660 = vmatprep.subr.bf16.mxu0 %v4508_v9 }
 0xdd1   : > { %3655 = vmatmul.mubr.msk.bf16.vlgmr.msra.gmra.mrb[44].mxu1 %vm1481_vm3, %v2425_v13 }
 0xdd2   : > { %3670 = vmatprep.mubr.msk.bf16.mxu1 %vm4509_vm2, %v4508_v9  ;;  %3661 = vmatpush3.bf16.msra.mxu0 %v3886_v20 }
 0xdd3   : > { %3674 = vmatprep.subr.bf16.mxu0 %v4508_v9  ;;  %3667 = vmatpush3.bf16.msra.mxu1 %v3887_v51  ;;  %p3457_p2 = scmp.ne.s32.totalorder %s5914_s28, 1 }
 0xdd4   : > { %3668 = vmatprep.subr.bf16.mxu1 %v4508_v9 }
 0xdd7   : > { %3669 = vmatpush3.bf16.msra.mxu1 %v3888_v53 }
 0xe37   : > { %v2469_v14 = vpop.f32.mrb[24].mxu0 }
 0xe38   : > { %v3638_v15 = vpop.f32.mrb[25].mxu0 }
 0xe39   : > { %v2472_v16 = vpop.f32.mrb[26].mxu0 }
 0xe3a   : > { %v3639_v18 = vpop.f32.mrb[27].mxu0 }
 0xe9c   : > { %v2518_v21 = vpop.f32.mrb[40].mxu1 }
 0xe9d   : > { %2623 = vrot.lane.b32.xlu1 %v2518_v21, %s4515_s0  ;;  %v3644_v22 = vpop.f32.mrb[41].mxu1 }
 0xe9e   : > { %v2521_v23 = vpop.f32.mrb[42].mxu1 }
 0xe9f   : > { %v3645_v1 = vpop.f32.mrb[43].mxu1 }
 0xea0   : > { %v2567_v24 = vpop.f32.mrb[28].mxu0 }
 0xea1   : > { %2627 = vrot.lane.b32.xlu0 %v2567_v24, %s4516_s27  ;;  %v3650_v25 = vpop.f32.mrb[29].mxu0  ;;  %s5916_s27 = sld [smem:[#allocation80_spill]] (!%p3457_p2) }
 0xea2   : > { %v2570_v26 = vpop.f32.mrb[30].mxu0 }
 0xea3   : > { %v3651_v27 = vpop.f32.mrb[31].mxu0 }
 0xea4   : > { %v2616_v28 = vpop.f32.mrb[44].mxu1 }
 0xea5   : > { %2631 = vrot.lane.b32.xlu1 %v2616_v28, %s4517_s7  ;;  %v3656_v30 = vpop.f32.mrb[45].mxu1 }
 0xea6   : > { %v2619_v31 = vpop.f32.mrb[46].mxu1 }
 0xea7   : > { %v3657_v32 = vpop.f32.mrb[47].mxu1 }
 0xf0f   : > { %v2624_v33 = vpop.permute.xlu1 %2623 }
 0xf10   : > { %v2634_v35 = vsel %vm1481_vm3, %v2469_v14, %v2624_v33 }
 0xf13   : > { %v2628_v34 = vpop.permute.xlu0 %2627 }
 0xf14   : > { %v2635_v29 = vsel %vm1929_vm5, %v2634_v35, %v2628_v34 }
 0xf17   : > { %v2632_v36 = vpop.permute.xlu1 %2631 }
 0xf18   : > { %v2636_v37 = vsel %vm1931_vm6, %v2635_v29, %v2632_v36  ;;  %v3459_v29 = vld [vmem:[%s5916_s27] ss:$0 sm:$0xff] (!%p3457_p2) }
 0xf19   : > { %v2637_v38 = vpack.c.bf16 %v2636_v37, %v2636_v37 }
 0xf1b   : > { %3663 = vmatmul.mubr.msk.bf16.vlgmr.msra.gmra.mrb[32].mxu0 %vm1367_vm1, %v2637_v38 }
 0xf1c   : > { %3690 = vmatprep.mubr.msk.bf16.mxu0 %vm4509_vm2, %v4508_v9  ;;  %3675 = vmatpush3.bf16.msra.mxu0 %v3889_v54 }
 0xf1d   : > { %3676 = vmatprep.subr.bf16.mxu0 %v4508_v9 }
 0xf20   : > { %3677 = vmatpush3.bf16.msra.mxu0 %v3890_v55 }
 0xf21   : > { %3678 = vmatprep.subr.bf16.mxu0 %v4508_v9 }
 0xf24   : > { %3679 = vmatpush3.bf16.msra.mxu0 %v3891_v56 }
 0xf25   : > { %3680 = vmatprep.subr.bf16.mxu0 %v4508_v9 }
 0xf28   : > { %3681 = vmatpush3.bf16.msra.mxu0 %v3892_v57 }
 0xf29   : > { %3682 = vmatprep.subr.bf16.mxu0 %v4508_v9 }
 0xf2c   : > { %3683 = vmatpush3.bf16.msra.mxu0 %v3893_v58 }
 0xf2d   : > { %3684 = vmatprep.subr.bf16.mxu0 %v4508_v9 }
 0xf30   : > { %3685 = vmatpush3.bf16.msra.mxu0 %v3894_v59 }
 0xf31   : > { %3686 = vmatprep.subr.bf16.mxu0 %v4508_v9 }
 0xf34   : > { %3687 = vmatpush3.bf16.msra.mxu0 %v3895_v6 }
 0xf35   : > { %3688 = vmatprep.subr.bf16.mxu0 %v4508_v9  ;;  %v3456_v9 = vld [vmem:[%s1355_s6] ss:$0 sm:$0xff]  ;;  %s5915_s6 = sld [smem:[#allocation79_spill]] (!%p3457_p2) }
 0xf38   : > { %3689 = vmatpush3.bf16.msra.mxu0 %v3896_v7 }
 0xf3b   : > { %v3458_v34 = vld [vmem:[%s5915_s6] ss:$0 sm:$0xff] (!%p3457_p2) }
 0xfee   : > { %v2691_v39 = vpop.f32.mrb[32].mxu0 }
 0xfef   : > { %v2697_v41 = vadd.f32 %v2691_v39, %v5462_v17  ;;  %v3664_v42 = vpop.f32.mrb[33].mxu0 }
 0xff0   : > { %v2694_v43 = vpop.f32.mrb[34].mxu0 }
 0xff1   : > { %v5581_v44 = vadd.f32 %v3441_v40, %v2697_v41  ;;  %v3665_v45 = vpop.f32.mrb[35].mxu0 }
 0xff3   : > { %v2708_v46 = vsel %vm1367_vm1, %v5581_v44, 0.0 }
 0xff4   : > { %2709 = vadd.xlane.f32.xlu0 %v2708_v46 }
0x1081   : > { %v2710_v47 = vpop.xlane.xlu0 %2709 }
0x1082   : > { %v2711_v48 = vmul.f32 0.03125, %v2710_v47 }
0x1084   : > { %v2712_v49 = vsub.f32 %v5581_v44, %v2711_v48 }
0x1086   : > { %v2713_v50 = vmul.f32 %v2712_v49, %v2712_v49 }
0x1088   : > { %v2714_v17 = vsel %vm1367_vm1, %v2713_v50, 0.0 }
0x1089   : > { %2715 = vadd.xlane.f32.xlu1 %v2714_v17 }
0x1116   : > { %v2716_v60 = vpop.xlane.xlu1 %2715 }
0x1117   : > { %v2717_v62 = vmul.f32 0.03125, %v2716_v60 }
0x1119   : > { %v2718_v63 = vadd.f32 1e-06, %v2717_v62 }
0x111b   : > { %3933 = vrsqrt.f32 %v2718_v63 }
0x1125   : > { %v3934_v0 = vpop.eup %3933 }
0x1126   : > { %v2720_v2 = vmul.f32 %v3934_v0, %v2712_v49 }
0x1128   : > { %v2727_v61 = vmul.f32 %v3442_v52, %v2720_v2 }
0x112a   : > { %v2734_v4 = vadd.f32 %v3443_v3, %v2727_v61 }
0x112c   : > { %v2735_v5 = vpack.c.bf16 %v2734_v4, %v2734_v4 }
0x112e   : > { %3671 = vmatmul.mubr.msk.bf16.vlgmr.msra.gmra.mrb[48].mxu1 %vm1367_vm1, %v2735_v5 }
0x1201   : > { %v2797_v10 = vpop.f32.mrb[48].mxu1 }
0x1202   : > { %v2798_v11 = vadd.f32 %v3444_v8, %v2797_v10  ;;  %v3672_v12 = vpop.f32.mrb[49].mxu1 }
0x1203   : > { %v2800_v13 = vpop.f32.mrb[50].mxu1 }
0x1204   : > { %v2803_v14 = vmax.f32 %v2798_v11, 0.0  ;;  %v3673_v15 = vpop.f32.mrb[51].mxu1 }
0x1206   : > { %v2804_v16 = vpack.c.bf16 %v2803_v14, %v2803_v14 }
0x1208   : > { %3691 = vmatmul.mubr.bf16.vlgmr.msra.gmra.mrb[36].mxu0 %v2804_v16 }
0x12da   : > { %2921 = sbr.rel (%p3457_p2) target bundleno = 5146 (0x141a), region = 184 }
0x12db   : > { %v2903_v18 = vpop.f32.mrb[36].mxu0 }
0x12dc   : > { %v2915_v19 = vadd.f32 %v3456_v9, %v2903_v18  ;;  %v3692_v20 = vpop.f32.mrb[37].mxu0 }
0x12dd   : > { %v2906_v21 = vpop.f32.mrb[38].mxu0 }
0x12de   : > { %v2916_v22 = vadd.f32 %v2915_v19, %v5581_v44  ;;  %v3693_v23 = vpop.f32.mrb[39].mxu0 }
0x12e0   : > { %2917 = vst.msk [vmem:[#allocation2] sm:$0xff] %vm1367_vm1, %v2916_v22  ;;  %v2924_v1 = vsel (!%p3457_p2), %vm1367_vm1, %v2916_v22, 0.0 }
0x12e1   : > { %2925 = vadd.xlane.f32.xlu0 %v2924_v1 }
0x136e   : > { %v2926_v24 = vpop.xlane.xlu0 %2925 }
0x136f   : > { %v2927_v25 = vmul.f32 0.03125, %v2926_v24 }
0x1371   : > { %v2928_v26 = vsub.f32 %v2916_v22, %v2927_v25 }
0x1373   : > { %v2929_v27 = vmul.f32 %v2928_v26, %v2928_v26 }
0x1375   : > { %v2930_v28 = vsel %vm1367_vm1, %v2929_v27, 0.0 }
0x1376   : > { %2931 = vadd.xlane.f32.xlu0 %v2930_v28 }
0x1403   : > { %v2932_v30 = vpop.xlane.xlu0 %2931 }
0x1404   : > { %v2933_v31 = vmul.f32 0.03125, %v2932_v30 }
0x1406   : > { %v2934_v32 = vadd.f32 1e-06, %v2933_v31 }
0x1408   : > { %3935 = vrsqrt.f32 %v2934_v32 }
0x1412   : > { %v3936_v33 = vpop.eup %3935 }
0x1413   : > { %v2936_v35 = vmul.f32 %v3936_v33, %v2928_v26 }
0x1415   : > { %v2943_v36 = vmul.f32 %v3458_v34, %v2936_v35 }
0x1417   : > { %v2950_v37 = vadd.f32 %v3459_v29, %v2943_v36 }
0x1419   : > { %2951 = vst.msk [vmem:[%s5338_s1] sm:$0xff] %vm1367_vm1, %v2950_v37 }
0x141a PF: > { %s5917_s7 = sld [smem:[#allocation41_spill]]  ;;  %s5918_s4 = sld [smem:[#allocation49_spill]] }
0x141b   : > { %s5919_s21 = sld [smem:[#allocation81_spill]]  ;;  %s2966_s12 = sshll.u32 %s5338_s1, 4  ;;  %s2967_s12 = int_to_ptr.vmem [resolvable:$true] %s2966_s12 }
0x141c   : > { %s2953_s10 = scalar_lea.sflag [#allocation5], %s5179_s29  ;;  %s4323_s9 = scalar_lea.vmem %s2967_s12, 128 }
0x141d   : > { %p4324_p12 = scmp.ne.s32.totalorder %s2967_s12, %s4323_s9  ;;  %s4518_s24 = smov [#allocation20]  }
0x141e   : > { %s4327_s19 = sshll.u32 %s4518_s24, 4  ;;  %s4328_s19 = int_to_ptr.vmem [resolvable:$false] %s4327_s19 }
0x141f   : > { %s4329_s18 = scalar_lea.vmem %s4328_s19, 256  ;;  %p4330_p3 = scmp.lt.s32.totalorder %s2967_s12, %s4328_s19 }
0x1420   : > { %s3461_s22 = sshll.u32 %s5917_s7, 7  ;;  %p5920_p6 = scmp.ne.s32.totalorder %s5918_s4, 0 }
0x1421   : > { %s5643_s5 = scalar_lea.hbm %s5919_s21, %s3461_s22  ;;  %p4331_p11 = scmp.lt.s32.totalorder %s4329_s18, %s4323_s9 }
0x1422   : > { %p4325_p4 = pnand %p4324_p12, %p5920_p6 }
0x1423   : > { %p4332_p5 = por %p4331_p11, %p4330_p3 }
0x1424   : > { %p4326_p8 = pneg %p4325_p4 }
0x1426   : > { %p4333_p7 = pnand %p4332_p5, %p4326_p8 }
0x1428   : > { %4336 = shalt.err (!%p4333_p7)
}
0x1429   : > { %s4337_s29 = scalar_lea.hbm %s5643_s5, 128  ;;  %s4341_s13 = scalar_lea.hbm %s5919_s21, 256 }
0x142a   : > { %p4338_p10 = scmp.ne.s32.totalorder %s5643_s5, %s4337_s29  ;;  %p4342_p9 = scmp.lt.u32.totalorder %s5643_s5, %s5919_s21 }
0x142b   : > { %p4343_p1 = scmp.lt.u32.totalorder %s4341_s13, %s4337_s29  ;;  %p4345_p12 = scmp.lt.u32.totalorder %s4337_s29, %s5643_s5 }
0x142c   : > { %p4339_p13 = pnand %p4338_p10, %p5920_p6 }
0x142d   : > { %p4344_p2 = por %p4343_p1, %p4342_p9 }
0x142e   : > { %p4340_p0 = pneg %p4339_p13 }
0x142f   : > { %p4346_p4 = por %p4345_p12, %p4344_p2 }
0x1431   : > { %p4347_p8 = pnand %p4346_p4, %p4340_p0 }
0x1433   : > { %4350 = shalt.err (!%p4347_p8)
}
0x1434   : > { %3724 = dma.vmem_to_hbm [thread:$0]  (%p5920_p6), %s2967_s12, 128, %s5643_s5, %s2953_s10  }
0x1435 PF: > { %s5921_s8 = sld [smem:[#allocation44_spill]]  ;;  %s5922_s16 = sld [smem:[#allocation37_spill]] }
0x1436   : > { %s5923_s26 = sld [smem:[#allocation52_spill]] }
0x143b   : > { %p3776_p3 = scmp.ge.s32.totalorder %s5921_s8, 2  ;;  %s2978_s23 = sand.u32 1, %s5922_s16  }
0x143c   : > { %p5924_p11 = scmp.ne.s32.totalorder %s5923_s26, 0  ;;  %s2979_s3 = scalar_lea.sflag [#allocation5], %s2978_s23 }
0x143e   : > { %p3768_p5 = pnand %p3776_p3, %p5924_p11 }
0x1440   : > { %4448 = dma.done.wait (!%p3768_p5), %s2979_s3, 128  }
0x1441   : > { %4450 = vsyncadd (!%p3768_p5), %s2979_s3, 4294967168  ;;  %s46_s2 = sadd.s32 1, %s5921_s8   ;;  %s5925_s27 = sld [smem:[#allocation35_spill]] }
0x1442   : > { %p43_p7 = scmp.ge.s32.totalorder %s46_s2, 6   ;;  %s5926_s3 = sld [smem:[#allocation36_spill]] }
0x1443   : > { %s5927_s7 = sld [smem:[#allocation50_spill]]  ;;  %s5928_s28 = sld [smem:[#allocation38_spill]] }
0x1444   : > { %s5929_s8 = sld [smem:[#allocation39_spill]]  ;;  %s5930_s4 = sld [smem:[#allocation51_spill]] }
0x1445   : > { %s5931_s29 = sld [smem:[#allocation42_spill]]  ;;  %s5932_s0 = sld [smem:[#allocation43_spill]] }
0x1446   : > { %s5933_s9 = sld [smem:[#allocation46_spill]]  ;;  %s5934_s30 = sld [smem:[#allocation48_spill]] }
0x1447   :  { %45 = sbr.rel (!%p43_p7) target bundleno = 40 (0x28), region = 330 }
0x144e   :  { %2984 = vsyncpa [#allocation4], 1 }
0x144f   :  { %2986 = vsyncpa [#allocation4 + $0x1], 1 }
0x1450   :  { %2987 = vsyncpa [#allocation7], 1 }
0x1451   :  { %2989 = vsyncpa [#allocation7 + $0x1], 1 }
0x1452   :  { %2990 = vsyncpa [#allocation10], 1 }
0x1453   :  { %2991 = vsyncpa [#allocation5], 1 }
0x1454   :  { %2993 = vsyncpa [#allocation5 + $0x1], 1 }

</bundles_post_ra>
